<compile_context>
chip_gen: v5e
topology: v5e:2x2
jax: 0.10.0
libtpu: 0.0.40
codegen_flags: <defaults>
</compile_context>

<pallas_src>
import math

import jax
import jax.numpy as jnp
from jax import lax
from jax.experimental import pallas as pl
from jax.experimental.pallas import tpu as pltpu


# ----------------------------------------------------------------------------
# Pallas kernel: chunked 2D-PSGMU recurrence.  Each grid step processes Tc
# time steps with the input-projection chunk and output chunk resident in
# VMEM; hidden state is carried across chunks in VMEM scratch.
# ----------------------------------------------------------------------------
def _make_kernel(Tc, N, H, batch_size):
    roll_on_xlu = (N % 8 == 0) and (0 < batch_size < N)

    def kernel(xp_ref, bT_ref, cT_ref, out_ref, hrow_s, hcol_s):
        c = pl.program_id(0)

        @pl.when(c == 0)
        def _():
            hrow_s[...] = jnp.zeros_like(hrow_s)
            hcol_s[...] = jnp.zeros_like(hcol_s)

        # Weights are grid-invariant (constant index_map -> DMA'd once);
        # load them into vregs once per chunk, outside the time loop.
        bT = bT_ref[...]       # (H, 6H)
        cT = cT_ref[...]       # (H, 6H)

        def step(t, carry):
            h_row, h_col = carry
            # gate = x_proj[t] + h_row @ B_T + h_col @ C_T  (bias folded into x_proj)
            gate = (xp_ref[t]
                    + jnp.dot(h_row, bT, preferred_element_type=jnp.float32)
                    + jnp.dot(h_col, cT, preferred_element_type=jnp.float32))

            sig = jax.nn.sigmoid(gate[:, :4 * H])   # EUP
            tnh = jnp.tanh(gate[:, 4 * H:])          # EUP

            ugr = sig[:, 0 * H:1 * H]
            ogr = sig[:, 1 * H:2 * H]
            ugc = sig[:, 2 * H:3 * H]
            ogc = sig[:, 3 * H:4 * H]
            igr = tnh[:, :H]
            igc = tnh[:, H:]

            # (1-u)*h + u*i  ==  h + u*(i - h)   (one fewer VALU op per gate)
            h_row_new = jnp.tanh(h_row + ugr * (igr - h_row)) * ogr
            h_col_new = jnp.tanh(h_col + ugc * (igc - h_col)) * ogc

            # Store pre-roll states; avoid building a concatenated vreg.
            out_ref[t, :, :H] = h_row_new
            out_ref[t, :, H:] = h_col_new

            # torch.roll(h_col, shifts=batch_size, dims=0)
            if batch_size == N:
                h_col_next = h_col_new
            elif roll_on_xlu:
                h_col_next = pltpu.roll(h_col_new, shift=batch_size, axis=0)
            else:
                h_col_next = jnp.concatenate(
                    [h_col_new[N - batch_size:, :], h_col_new[:N - batch_size, :]],
                    axis=0)
            return h_row_new, h_col_next

        unroll = True if Tc <= 8 else 8
        h_row, h_col = lax.fori_loop(
            0, Tc, step, (hrow_s[...], hcol_s[...]), unroll=unroll)

        hrow_s[...] = h_row
        hcol_s[...] = h_col

    return kernel


# ----------------------------------------------------------------------------
# Fold the 5 linear layers into the recurrence form
#   gate = x @ A_T + h_row @ B_T + h_col @ C_T + b_eff          (exact algebra)
# ----------------------------------------------------------------------------
def _fold_params(params, hidden_size):
    H = hidden_size
    hi = jax.lax.Precision.HIGHEST
    WfT = params['W_first'].T.astype(jnp.float32)               # (2H + I, 6H)
    WfT_r = WfT[:H]                                             # (H, 6H)
    WfT_c = WfT[H:2 * H]                                        # (H, 6H)
    WfT_x = WfT[2 * H:]                                         # (I, 6H)

    A_T = (jnp.dot(params['W_row_xm'].T.astype(jnp.float32), WfT_r, precision=hi)
           + jnp.dot(params['W_col_xm'].T.astype(jnp.float32), WfT_c, precision=hi)
           + WfT_x)                                             # (I, 6H)
    B_T = jnp.dot(params['W_row_m'].T.astype(jnp.float32), WfT_r, precision=hi)
    C_T = jnp.dot(params['W_col_m'].T.astype(jnp.float32), WfT_c, precision=hi)
    b_eff = (jnp.dot((params['b_row_xm'] + params['b_row_m']).astype(jnp.float32),
                     WfT_r, precision=hi)
             + jnp.dot((params['b_col_xm'] + params['b_col_m']).astype(jnp.float32),
                       WfT_c, precision=hi)
             + params['b_first'].astype(jnp.float32))           # (6H,)
    return A_T, B_T, C_T, b_eff


def _run_recurrence(xp, B_T, C_T, batch_size, hidden_size):
    """xp: (T, N, 6H) float32 (x-projection + bias) -> (T, N, 2H) float32."""
    T, N, G = xp.shape
    H = hidden_size
    assert G == 6 * H

    # Chunk the time axis.  Budget ~8 MiB for the double-buffered in/out
    # blocks so the kernel fits the default scoped VMEM on v5e/v6e/v7x.
    bytes_per_step = N * (6 * H + 2 * H) * 4 * 2
    budget = 8 * 1024 * 1024
    Tc_max = int(max(1, min(T, budget // max(1, bytes_per_step))))
    num_chunks = pl.cdiv(T, Tc_max)
    # Rebalance: same chunk count, smaller chunks -> padded (wasted) steps at
    # the tail drop to < num_chunks while staying within the VMEM budget.
    Tc = pl.cdiv(T, num_chunks)
    num_chunks = pl.cdiv(T, Tc)
    T_pad = num_chunks * Tc
    if T_pad != T:
        # Trailing padded steps produce unused rows; recurrence is forward-only
        # so they cannot affect valid outputs.
        xp = jnp.pad(xp, ((0, T_pad - T), (0, 0), (0, 0)))

    kernel = _make_kernel(Tc, N, H, batch_size)

    out = pl.pallas_call(
        kernel,
        out_shape=jax.ShapeDtypeStruct((T_pad, N, 2 * H), jnp.float32),
        grid=(num_chunks,),
        in_specs=[
            pl.BlockSpec((Tc, N, 6 * H), lambda c: (c, 0, 0)),  # x-projection chunk
            pl.BlockSpec((H, 6 * H), lambda c: (0, 0)),         # B_T (invariant)
            pl.BlockSpec((H, 6 * H), lambda c: (0, 0)),         # C_T (invariant)
        ],
        out_specs=pl.BlockSpec((Tc, N, 2 * H), lambda c: (c, 0, 0)),
        scratch_shapes=[pltpu.VMEM((N, H), jnp.float32),        # hidden_slice_row
                        pltpu.VMEM((N, H), jnp.float32)],       # hidden_slice_col
        compiler_params=pltpu.CompilerParams(
            dimension_semantics=("arbitrary",)),                # sequential recurrence
    )(xp.astype(jnp.float32), B_T, C_T)
    return out[:T]


# ----------------------------------------------------------------------------
# Wrapper reproducing WITRAN_2DPSGMU_Encoder.forward (num_layers == 1).
# ----------------------------------------------------------------------------
def witran_encoder_forward(x, params, hidden_size, num_layers=1):
    assert num_layers == 1, "PyTorch module lacks W_other_layer; only 1 layer works"
    batch_size, row, col, input_size = x.shape
    H = hidden_size
    I = input_size

    if col > row:
        inp = jnp.transpose(x, (2, 0, 1, 3))
    else:
        inp = jnp.transpose(x, (1, 0, 2, 3))
    R, _, L, _ = inp.shape          # Water2sea_slice_num, Original_slice_len
    T = R + L - 1                   # Water2sea_slice_len
    N = R * batch_size

    # Water-to-sea diagonal shift (input_transfer[r, :, r:r+L] = inp[r]) built
    # with a single pad+reshape skew instead of R dynamic-update-slices.
    inp_b = jnp.transpose(inp, (1, 0, 2, 3)).astype(jnp.float32)   # (batch, R, L, I)
    inp_p = jnp.pad(inp_b, ((0, 0), (0, 0), (0, R), (0, 0)))       # (batch, R, R+L, I)
    a_bt = inp_p.reshape(batch_size, R * (R + L), I)[:, :R * T, :]
    a_bt = a_bt.reshape(batch_size, R, T, I)                       # shifted (batch, R, T, I)
    a_t = jnp.transpose(a_bt, (2, 1, 0, 3)).reshape(T, N, I)       # (T, N, I), row = r*batch + b

    # Folded weights + hoisted input projection (one big matmul, not T tiny ones).
    A_T, B_T, C_T, b_eff = _fold_params(params, H)
    xp = (jnp.einsum('tni,ig->tng', a_t, A_T,
                     precision=jax.lax.Precision.HIGHEST)
          + b_eff)                                                 # (T, N, 6H)

    # TODO(synk): on v7x the batch index is independent under the roll and could
    # be split across the two TensorCores with a leading "parallel" grid axis.
    out_t = _run_recurrence(xp, B_T, C_T, batch_size, H)           # (T, N, 2H)
    output_all_slice = jnp.transpose(out_t, (1, 0, 2))             # (N, T, 2H)

    # Final hidden states via single gathers (no Python list loops).
    out4 = output_all_slice.reshape(R, batch_size, T, 2 * H)
    r_idx = jnp.arange(R)
    # hidden_row_all[b, r] = h_row at step L-1+r, rows r*batch:(r+1)*batch
    hidden_row_all = out4[r_idx, :, L - 1 + r_idx, :H]             # (R, batch, H)
    hidden_row_all = jnp.transpose(hidden_row_all, (1, 0, 2))
    hidden_row_all = hidden_row_all.reshape(batch_size, num_layers, R, H)
    # hidden_col_all[b, j] = h_col (pre-roll) at step R-1+j, last batch chunk
    hidden_col_all = out4[R - 1][:, R - 1 + jnp.arange(L), H:]     # (batch, L, H)
    hidden_col_all = hidden_col_all.reshape(batch_size, num_layers, L, H)

    if col > row:
        return output_all_slice, hidden_col_all, hidden_row_all
    else:
        return output_all_slice, hidden_row_all, hidden_col_all


# ----------------------------------------------------------------------------
# Pure-JAX reference (direct transcription of the PyTorch forward).
# ----------------------------------------------------------------------------
def witran_reference(x, params, hidden_size, num_layers=1):
    batch_size, row, col, input_size = x.shape
    H = hidden_size
    if col > row:
        inp = jnp.transpose(x, (2, 0, 1, 3))
    else:
        inp = jnp.transpose(x, (1, 0, 2, 3))
    R, _, L, _ = inp.shape
    T = R + L - 1
    N = R * batch_size

    lin = lambda v, W, b: jnp.dot(v, W.T, precision=jax.lax.Precision.HIGHEST) + b

    h_row = jnp.zeros((N, H), jnp.float32)
    h_col = jnp.zeros((N, H), jnp.float32)
    input_transfer = jnp.zeros((R, batch_size, T, input_size), jnp.float32)
    for r in range(R):
        input_transfer = input_transfer.at[r, :, r:r + L, :].set(inp[r])
    a = input_transfer.reshape(N, T, input_size)

    out_list, row_list, col_list = [], [], []
    for s in range(T):
        xs = a[:, s, :]
        rowm = lin(xs, params['W_row_xm'], params['b_row_xm']) + \
               lin(h_row, params['W_row_m'], params['b_row_m'])
        colm = lin(xs, params['W_col_xm'], params['b_col_xm']) + \
               lin(h_col, params['W_col_m'], params['b_col_m'])
        gate = lin(jnp.concatenate([rowm, colm, xs], -1),
                   params['W_first'], params['b_first'])
        sig = jax.nn.sigmoid(gate[:, :4 * H])
        tnh = jnp.tanh(gate[:, 4 * H:])
        ugr, ogr, ugc, ogc = jnp.split(sig, 4, axis=-1)
        igr, igc = jnp.split(tnh, 2, axis=-1)
        h_row = jnp.tanh((1 - ugr) * h_row + ugr * igr) * ogr
        h_col = jnp.tanh((1 - ugc) * h_col + ugc * igc) * ogc
        out_list.append(jnp.concatenate([h_row, h_col], -1))
        if s >= L - 1:
            r0 = s - L + 1
            row_list.append(h_row[r0 * batch_size:(r0 + 1) * batch_size, :])
        if s >= R - 1:
            col_list.append(h_col[(R - 1) * batch_size:, :])
        h_col = jnp.roll(h_col, shift=batch_size, axis=0)

    output_all_slice = jnp.stack(out_list, axis=1)
    hidden_row_all = jnp.stack(row_list, axis=1).reshape(batch_size, num_layers, R, H)
    hidden_col_all = jnp.stack(col_list, axis=1).reshape(batch_size, num_layers, L, H)
    if col > row:
        return output_all_slice, hidden_col_all, hidden_row_all
    else:
        return output_all_slice, hidden_row_all, hidden_col_all


# ----------------------------------------------------------------------------
# Deterministic parameter init (mirrors reset_parameters: U(-1/sqrt(H), 1/sqrt(H))).
# ----------------------------------------------------------------------------
def init_params(key, input_size, hidden_size):
    H, I = hidden_size, input_size
    stdv = 1.0 / math.sqrt(H)
    ks = jax.random.split(key, 10)
    u = lambda k, shape: jax.random.uniform(k, shape, jnp.float32, -stdv, stdv)
    return {
        'W_first':  u(ks[0], (6 * H, I + 2 * H)),
        'b_first':  u(ks[1], (6 * H,)),
        'W_row_m':  u(ks[2], (H, H)),
        'b_row_m':  u(ks[3], (H,)),
        'W_col_m':  u(ks[4], (H, H)),
        'b_col_m':  u(ks[5], (H,)),
        'W_row_xm': u(ks[6], (H, I)),
        'b_row_xm': u(ks[7], (H,)),
        'W_col_xm': u(ks[8], (H, I)),
        'b_col_xm': u(ks[9], (H,)),
    }


if __name__ == "__main__":
    # Small shapes: batch=2, row=4, col=4, input_size=8, hidden=32, num_layers=1
    batch, row, col, input_size, hidden = 2, 4, 4, 8, 32

    key = jax.random.PRNGKey(0)
    kx, kp = jax.random.split(key)
    x = jax.random.normal(kx, (batch, row, col, input_size), jnp.float32)
    params = init_params(kp, input_size, hidden)

    out, h_row_all, h_col_all = jax.block_until_ready(
        witran_encoder_forward(x, params, hidden, num_layers=1))

    # Sanity-check against the pure-JAX transcription of the PyTorch forward.
    # (The weight folding changes summation order; drift stays within 1e-3.)
    ref_out, ref_row, ref_col = witran_reference(x, params, hidden, num_layers=1)
    assert out.shape == ref_out.shape and h_row_all.shape == ref_row.shape \
        and h_col_all.shape == ref_col.shape
    assert jnp.allclose(out, ref_out, atol=1e-3, rtol=1e-3)
    assert jnp.allclose(h_row_all, ref_row, atol=1e-3, rtol=1e-3)
    assert jnp.allclose(h_col_all, ref_col, atol=1e-3, rtol=1e-3)

    print("KERNEL_OK")
</pallas_src>

<mosaic_0001>
module attributes {stable_mosaic.version = 11 : i64} {
  func.func @kernel(%arg0: i32, %arg1: memref<7x8x192xf32, #tpu.memory_space<vmem>>, %arg2: memref<32x192xf32, #tpu.memory_space<vmem>>, %arg3: memref<32x192xf32, #tpu.memory_space<vmem>>, %arg4: memref<7x8x64xf32, #tpu.memory_space<vmem>>, %arg5: memref<8x32xf32, #tpu.memory_space<vmem>>, %arg6: memref<8x32xf32, #tpu.memory_space<vmem>>) attributes {dimension_semantics = [#tpu.dimension_semantics<arbitrary>], iteration_bounds = array<i64: 1>, scalar_prefetch = 0 : i64, scratch_operands = 2 : i64, tpu.core_type = #tpu.core_type<tc>, window_params = [{transform_indices = @transform_0, window_bounds = array<i64: 7, 8, 192>}, {pipeline_mode = #tpu.pipeline_mode<synchronous>, transform_indices = @transform_1, window_bounds = array<i64: 32, 192>}, {pipeline_mode = #tpu.pipeline_mode<synchronous>, transform_indices = @transform_2, window_bounds = array<i64: 32, 192>}, {transform_indices = @transform_3, window_bounds = array<i64: 7, 8, 64>}]} {
    %c0_i32 = arith.constant 0 : i32
    %0 = arith.cmpi eq, %arg0, %c0_i32 : i32
    %1 = arith.extui %0 : i1 to i32
    %c0_i32_0 = arith.constant 0 : i32
    %2 = arith.cmpi ne, %1, %c0_i32_0 : i32
    scf.if %2 {
      %cst_81 = arith.constant 0.000000e+00 : f32
      %289 = vector.broadcast %cst_81 : f32 to vector<8x32xf32>
      %c0_82 = arith.constant 0 : index
      %c0_83 = arith.constant 0 : index
      %290 = vector.load %arg5[%c0_82, %c0_83] : memref<8x32xf32, #tpu.memory_space<vmem>>, vector<8x32xf32>
      tpu.vector_store %arg5[%c0_82, %c0_83], %289 {strides = array<i32>} : memref<8x32xf32, #tpu.memory_space<vmem>>, vector<8x32xf32>,
      %cst_84 = arith.constant 0.000000e+00 : f32
      %291 = vector.broadcast %cst_84 : f32 to vector<8x32xf32>
      %c0_85 = arith.constant 0 : index
      %c0_86 = arith.constant 0 : index
      %292 = vector.load %arg6[%c0_85, %c0_86] : memref<8x32xf32, #tpu.memory_space<vmem>>, vector<8x32xf32>
      tpu.vector_store %arg6[%c0_85, %c0_86], %291 {strides = array<i32>} : memref<8x32xf32, #tpu.memory_space<vmem>>, vector<8x32xf32>,
    } else {
    }
    %c0 = arith.constant 0 : index
    %c0_1 = arith.constant 0 : index
    %3 = vector.load %arg2[%c0, %c0_1] : memref<32x192xf32, #tpu.memory_space<vmem>>, vector<32x192xf32>
    %c0_2 = arith.constant 0 : index
    %c0_3 = arith.constant 0 : index
    %4 = vector.load %arg3[%c0_2, %c0_3] : memref<32x192xf32, #tpu.memory_space<vmem>>, vector<32x192xf32>
    %c0_4 = arith.constant 0 : index
    %c0_5 = arith.constant 0 : index
    %5 = vector.load %arg5[%c0_4, %c0_5] : memref<8x32xf32, #tpu.memory_space<vmem>>, vector<8x32xf32>
    %c0_6 = arith.constant 0 : index
    %c0_7 = arith.constant 0 : index
    %6 = vector.load %arg6[%c0_6, %c0_7] : memref<8x32xf32, #tpu.memory_space<vmem>>, vector<8x32xf32>
    %c0_i32_8 = arith.constant 0 : i32
    %7 = arith.index_cast %c0_i32_8 : i32 to index
    %c0_9 = arith.constant 0 : index
    %c0_10 = arith.constant 0 : index
    %8 = vector.load %arg1[%7, %c0_9, %c0_10] : memref<7x8x192xf32, #tpu.memory_space<vmem>>, vector<1x8x192xf32>
    %9 = vector.shape_cast %8 : vector<1x8x192xf32> to vector<8x192xf32>
    %cst = arith.constant dense<0.000000e+00> : vector<8x192xf32>
    %10 = tpu.matmul %5, %3, %cst {dimension_numbers = #tpu.dot_dimension_numbers<[1], [0], [0], [1], [0, 0, 1, 1], [], []>} : vector<8x32xf32>, vector<32x192xf32>, vector<8x192xf32> -> vector<8x192xf32>
    %11 = arith.addf %9, %10 : vector<8x192xf32>
    %cst_11 = arith.constant dense<0.000000e+00> : vector<8x192xf32>
    %12 = tpu.matmul %6, %4, %cst_11 {dimension_numbers = #tpu.dot_dimension_numbers<[1], [0], [0], [1], [0, 0, 1, 1], [], []>} : vector<8x32xf32>, vector<32x192xf32>, vector<8x192xf32> -> vector<8x192xf32>
    %13 = arith.addf %11, %12 : vector<8x192xf32>
    %14 = vector.extract_strided_slice %13 {offsets = [0, 0], sizes = [8, 128], strides = [1, 1]} : vector<8x192xf32> to vector<8x128xf32>
    %15 = arith.negf %14 : vector<8x128xf32>
    %16 = math.exp %15 : vector<8x128xf32>
    %cst_12 = arith.constant 1.000000e+00 : f32
    %17 = vector.broadcast %cst_12 : f32 to vector<8x128xf32>
    %18 = arith.addf %17, %16 : vector<8x128xf32>
    %19 = arith.divf %17, %18 : vector<8x128xf32>
    %20 = vector.extract_strided_slice %13 {offsets = [0, 128], sizes = [8, 64], strides = [1, 1]} : vector<8x192xf32> to vector<8x64xf32>
    %21 = math.tanh %20 : vector<8x64xf32>
    %22 = vector.extract_strided_slice %19 {offsets = [0, 0], sizes = [8, 32], strides = [1, 1]} : vector<8x128xf32> to vector<8x32xf32>
    %23 = vector.extract_strided_slice %19 {offsets = [0, 32], sizes = [8, 32], strides = [1, 1]} : vector<8x128xf32> to vector<8x32xf32>
    %24 = vector.extract_strided_slice %19 {offsets = [0, 64], sizes = [8, 32], strides = [1, 1]} : vector<8x128xf32> to vector<8x32xf32>
    %25 = vector.extract_strided_slice %19 {offsets = [0, 96], sizes = [8, 32], strides = [1, 1]} : vector<8x128xf32> to vector<8x32xf32>
    %26 = vector.extract_strided_slice %21 {offsets = [0, 0], sizes = [8, 32], strides = [1, 1]} : vector<8x64xf32> to vector<8x32xf32>
    %27 = vector.extract_strided_slice %21 {offsets = [0, 32], sizes = [8, 32], strides = [1, 1]} : vector<8x64xf32> to vector<8x32xf32>
    %28 = arith.subf %26, %5 : vector<8x32xf32>
    %29 = arith.mulf %22, %28 : vector<8x32xf32>
    %30 = arith.addf %5, %29 : vector<8x32xf32>
    %31 = math.tanh %30 : vector<8x32xf32>
    %32 = arith.mulf %31, %23 : vector<8x32xf32>
    %33 = arith.subf %27, %6 : vector<8x32xf32>
    %34 = arith.mulf %24, %33 : vector<8x32xf32>
    %35 = arith.addf %6, %34 : vector<8x32xf32>
    %36 = math.tanh %35 : vector<8x32xf32>
    %37 = arith.mulf %36, %25 : vector<8x32xf32>
    %38 = arith.index_cast %c0_i32_8 : i32 to index
    %c0_13 = arith.constant 0 : index
    %c0_14 = arith.constant 0 : index
    %39 = vector.load %arg4[%38, %c0_13, %c0_14] : memref<7x8x64xf32, #tpu.memory_space<vmem>>, vector<1x8x32xf32>
    %40 = vector.shape_cast %39 : vector<1x8x32xf32> to vector<8x32xf32>
    %41 = vector.shape_cast %32 : vector<8x32xf32> to vector<1x8x32xf32>
    tpu.vector_store %arg4[%38, %c0_13, %c0_14], %41 {strides = array<i32>} : memref<7x8x64xf32, #tpu.memory_space<vmem>>, vector<1x8x32xf32>,
    %42 = arith.index_cast %c0_i32_8 : i32 to index
    %c0_15 = arith.constant 0 : index
    %c32 = arith.constant 32 : index
    %43 = vector.load %arg4[%42, %c0_15, %c32] : memref<7x8x64xf32, #tpu.memory_space<vmem>>, vector<1x8x32xf32>
    %44 = vector.shape_cast %43 : vector<1x8x32xf32> to vector<8x32xf32>
    %45 = vector.shape_cast %37 : vector<8x32xf32> to vector<1x8x32xf32>
    tpu.vector_store %arg4[%42, %c0_15, %c32], %45 {strides = array<i32>} : memref<7x8x64xf32, #tpu.memory_space<vmem>>, vector<1x8x32xf32>,
    %c2_i32 = arith.constant 2 : i32
    %46 = tpu.dynamic_rotate %37 by %c2_i32 dim 0 : vector<8x32xf32>, i32 -> vector<8x32xf32>
    %c1_i32 = arith.constant 1 : i32
    %47 = arith.index_cast %c1_i32 : i32 to index
    %c0_16 = arith.constant 0 : index
    %c0_17 = arith.constant 0 : index
    %48 = vector.load %arg1[%47, %c0_16, %c0_17] : memref<7x8x192xf32, #tpu.memory_space<vmem>>, vector<1x8x192xf32>
    %49 = vector.shape_cast %48 : vector<1x8x192xf32> to vector<8x192xf32>
    %cst_18 = arith.constant dense<0.000000e+00> : vector<8x192xf32>
    %50 = tpu.matmul %32, %3, %cst_18 {dimension_numbers = #tpu.dot_dimension_numbers<[1], [0], [0], [1], [0, 0, 1, 1], [], []>} : vector<8x32xf32>, vector<32x192xf32>, vector<8x192xf32> -> vector<8x192xf32>
    %51 = arith.addf %49, %50 : vector<8x192xf32>
    %cst_19 = arith.constant dense<0.000000e+00> : vector<8x192xf32>
    %52 = tpu.matmul %46, %4, %cst_19 {dimension_numbers = #tpu.dot_dimension_numbers<[1], [0], [0], [1], [0, 0, 1, 1], [], []>} : vector<8x32xf32>, vector<32x192xf32>, vector<8x192xf32> -> vector<8x192xf32>
    %53 = arith.addf %51, %52 : vector<8x192xf32>
    %54 = vector.extract_strided_slice %53 {offsets = [0, 0], sizes = [8, 128], strides = [1, 1]} : vector<8x192xf32> to vector<8x128xf32>
    %55 = arith.negf %54 : vector<8x128xf32>
    %56 = math.exp %55 : vector<8x128xf32>
    %cst_20 = arith.constant 1.000000e+00 : f32
    %57 = vector.broadcast %cst_20 : f32 to vector<8x128xf32>
    %58 = arith.addf %57, %56 : vector<8x128xf32>
    %59 = arith.divf %57, %58 : vector<8x128xf32>
    %60 = vector.extract_strided_slice %53 {offsets = [0, 128], sizes = [8, 64], strides = [1, 1]} : vector<8x192xf32> to vector<8x64xf32>
    %61 = math.tanh %60 : vector<8x64xf32>
    %62 = vector.extract_strided_slice %59 {offsets = [0, 0], sizes = [8, 32], strides = [1, 1]} : vector<8x128xf32> to vector<8x32xf32>
    %63 = vector.extract_strided_slice %59 {offsets = [0, 32], sizes = [8, 32], strides = [1, 1]} : vector<8x128xf32> to vector<8x32xf32>
    %64 = vector.extract_strided_slice %59 {offsets = [0, 64], sizes = [8, 32], strides = [1, 1]} : vector<8x128xf32> to vector<8x32xf32>
    %65 = vector.extract_strided_slice %59 {offsets = [0, 96], sizes = [8, 32], strides = [1, 1]} : vector<8x128xf32> to vector<8x32xf32>
    %66 = vector.extract_strided_slice %61 {offsets = [0, 0], sizes = [8, 32], strides = [1, 1]} : vector<8x64xf32> to vector<8x32xf32>
    %67 = vector.extract_strided_slice %61 {offsets = [0, 32], sizes = [8, 32], strides = [1, 1]} : vector<8x64xf32> to vector<8x32xf32>
    %68 = arith.subf %66, %32 : vector<8x32xf32>
    %69 = arith.mulf %62, %68 : vector<8x32xf32>
    %70 = arith.addf %32, %69 : vector<8x32xf32>
    %71 = math.tanh %70 : vector<8x32xf32>
    %72 = arith.mulf %71, %63 : vector<8x32xf32>
    %73 = arith.subf %67, %46 : vector<8x32xf32>
    %74 = arith.mulf %64, %73 : vector<8x32xf32>
    %75 = arith.addf %46, %74 : vector<8x32xf32>
    %76 = math.tanh %75 : vector<8x32xf32>
    %77 = arith.mulf %76, %65 : vector<8x32xf32>
    %78 = arith.index_cast %c1_i32 : i32 to index
    %c0_21 = arith.constant 0 : index
    %c0_22 = arith.constant 0 : index
    %79 = vector.load %arg4[%78, %c0_21, %c0_22] : memref<7x8x64xf32, #tpu.memory_space<vmem>>, vector<1x8x32xf32>
    %80 = vector.shape_cast %79 : vector<1x8x32xf32> to vector<8x32xf32>
    %81 = vector.shape_cast %72 : vector<8x32xf32> to vector<1x8x32xf32>
    tpu.vector_store %arg4[%78, %c0_21, %c0_22], %81 {strides = array<i32>} : memref<7x8x64xf32, #tpu.memory_space<vmem>>, vector<1x8x32xf32>,
    %82 = arith.index_cast %c1_i32 : i32 to index
    %c0_23 = arith.constant 0 : index
    %c32_24 = arith.constant 32 : index
    %83 = vector.load %arg4[%82, %c0_23, %c32_24] : memref<7x8x64xf32, #tpu.memory_space<vmem>>, vector<1x8x32xf32>
    %84 = vector.shape_cast %83 : vector<1x8x32xf32> to vector<8x32xf32>
    %85 = vector.shape_cast %77 : vector<8x32xf32> to vector<1x8x32xf32>
    tpu.vector_store %arg4[%82, %c0_23, %c32_24], %85 {strides = array<i32>} : memref<7x8x64xf32, #tpu.memory_space<vmem>>, vector<1x8x32xf32>,
    %c2_i32_25 = arith.constant 2 : i32
    %86 = tpu.dynamic_rotate %77 by %c2_i32_25 dim 0 : vector<8x32xf32>, i32 -> vector<8x32xf32>
    %c2_i32_26 = arith.constant 2 : i32
    %87 = arith.index_cast %c2_i32_26 : i32 to index
    %c0_27 = arith.constant 0 : index
    %c0_28 = arith.constant 0 : index
    %88 = vector.load %arg1[%87, %c0_27, %c0_28] : memref<7x8x192xf32, #tpu.memory_space<vmem>>, vector<1x8x192xf32>
    %89 = vector.shape_cast %88 : vector<1x8x192xf32> to vector<8x192xf32>
    %cst_29 = arith.constant dense<0.000000e+00> : vector<8x192xf32>
    %90 = tpu.matmul %72, %3, %cst_29 {dimension_numbers = #tpu.dot_dimension_numbers<[1], [0], [0], [1], [0, 0, 1, 1], [], []>} : vector<8x32xf32>, vector<32x192xf32>, vector<8x192xf32> -> vector<8x192xf32>
    %91 = arith.addf %89, %90 : vector<8x192xf32>
    %cst_30 = arith.constant dense<0.000000e+00> : vector<8x192xf32>
    %92 = tpu.matmul %86, %4, %cst_30 {dimension_numbers = #tpu.dot_dimension_numbers<[1], [0], [0], [1], [0, 0, 1, 1], [], []>} : vector<8x32xf32>, vector<32x192xf32>, vector<8x192xf32> -> vector<8x192xf32>
    %93 = arith.addf %91, %92 : vector<8x192xf32>
    %94 = vector.extract_strided_slice %93 {offsets = [0, 0], sizes = [8, 128], strides = [1, 1]} : vector<8x192xf32> to vector<8x128xf32>
    %95 = arith.negf %94 : vector<8x128xf32>
    %96 = math.exp %95 : vector<8x128xf32>
    %cst_31 = arith.constant 1.000000e+00 : f32
    %97 = vector.broadcast %cst_31 : f32 to vector<8x128xf32>
    %98 = arith.addf %97, %96 : vector<8x128xf32>
    %99 = arith.divf %97, %98 : vector<8x128xf32>
    %100 = vector.extract_strided_slice %93 {offsets = [0, 128], sizes = [8, 64], strides = [1, 1]} : vector<8x192xf32> to vector<8x64xf32>
    %101 = math.tanh %100 : vector<8x64xf32>
    %102 = vector.extract_strided_slice %99 {offsets = [0, 0], sizes = [8, 32], strides = [1, 1]} : vector<8x128xf32> to vector<8x32xf32>
    %103 = vector.extract_strided_slice %99 {offsets = [0, 32], sizes = [8, 32], strides = [1, 1]} : vector<8x128xf32> to vector<8x32xf32>
    %104 = vector.extract_strided_slice %99 {offsets = [0, 64], sizes = [8, 32], strides = [1, 1]} : vector<8x128xf32> to vector<8x32xf32>
    %105 = vector.extract_strided_slice %99 {offsets = [0, 96], sizes = [8, 32], strides = [1, 1]} : vector<8x128xf32> to vector<8x32xf32>
    %106 = vector.extract_strided_slice %101 {offsets = [0, 0], sizes = [8, 32], strides = [1, 1]} : vector<8x64xf32> to vector<8x32xf32>
    %107 = vector.extract_strided_slice %101 {offsets = [0, 32], sizes = [8, 32], strides = [1, 1]} : vector<8x64xf32> to vector<8x32xf32>
    %108 = arith.subf %106, %72 : vector<8x32xf32>
    %109 = arith.mulf %102, %108 : vector<8x32xf32>
    %110 = arith.addf %72, %109 : vector<8x32xf32>
    %111 = math.tanh %110 : vector<8x32xf32>
    %112 = arith.mulf %111, %103 : vector<8x32xf32>
    %113 = arith.subf %107, %86 : vector<8x32xf32>
    %114 = arith.mulf %104, %113 : vector<8x32xf32>
    %115 = arith.addf %86, %114 : vector<8x32xf32>
    %116 = math.tanh %115 : vector<8x32xf32>
    %117 = arith.mulf %116, %105 : vector<8x32xf32>
    %118 = arith.index_cast %c2_i32_26 : i32 to index
    %c0_32 = arith.constant 0 : index
    %c0_33 = arith.constant 0 : index
    %119 = vector.load %arg4[%118, %c0_32, %c0_33] : memref<7x8x64xf32, #tpu.memory_space<vmem>>, vector<1x8x32xf32>
    %120 = vector.shape_cast %119 : vector<1x8x32xf32> to vector<8x32xf32>
    %121 = vector.shape_cast %112 : vector<8x32xf32> to vector<1x8x32xf32>
    tpu.vector_store %arg4[%118, %c0_32, %c0_33], %121 {strides = array<i32>} : memref<7x8x64xf32, #tpu.memory_space<vmem>>, vector<1x8x32xf32>,
    %122 = arith.index_cast %c2_i32_26 : i32 to index
    %c0_34 = arith.constant 0 : index
    %c32_35 = arith.constant 32 : index
    %123 = vector.load %arg4[%122, %c0_34, %c32_35] : memref<7x8x64xf32, #tpu.memory_space<vmem>>, vector<1x8x32xf32>
    %124 = vector.shape_cast %123 : vector<1x8x32xf32> to vector<8x32xf32>
    %125 = vector.shape_cast %117 : vector<8x32xf32> to vector<1x8x32xf32>
    tpu.vector_store %arg4[%122, %c0_34, %c32_35], %125 {strides = array<i32>} : memref<7x8x64xf32, #tpu.memory_space<vmem>>, vector<1x8x32xf32>,
    %c2_i32_36 = arith.constant 2 : i32
    %126 = tpu.dynamic_rotate %117 by %c2_i32_36 dim 0 : vector<8x32xf32>, i32 -> vector<8x32xf32>
    %c3_i32 = arith.constant 3 : i32
    %127 = arith.index_cast %c3_i32 : i32 to index
    %c0_37 = arith.constant 0 : index
    %c0_38 = arith.constant 0 : index
    %128 = vector.load %arg1[%127, %c0_37, %c0_38] : memref<7x8x192xf32, #tpu.memory_space<vmem>>, vector<1x8x192xf32>
    %129 = vector.shape_cast %128 : vector<1x8x192xf32> to vector<8x192xf32>
    %cst_39 = arith.constant dense<0.000000e+00> : vector<8x192xf32>
    %130 = tpu.matmul %112, %3, %cst_39 {dimension_numbers = #tpu.dot_dimension_numbers<[1], [0], [0], [1], [0, 0, 1, 1], [], []>} : vector<8x32xf32>, vector<32x192xf32>, vector<8x192xf32> -> vector<8x192xf32>
    %131 = arith.addf %129, %130 : vector<8x192xf32>
    %cst_40 = arith.constant dense<0.000000e+00> : vector<8x192xf32>
    %132 = tpu.matmul %126, %4, %cst_40 {dimension_numbers = #tpu.dot_dimension_numbers<[1], [0], [0], [1], [0, 0, 1, 1], [], []>} : vector<8x32xf32>, vector<32x192xf32>, vector<8x192xf32> -> vector<8x192xf32>
    %133 = arith.addf %131, %132 : vector<8x192xf32>
    %134 = vector.extract_strided_slice %133 {offsets = [0, 0], sizes = [8, 128], strides = [1, 1]} : vector<8x192xf32> to vector<8x128xf32>
    %135 = arith.negf %134 : vector<8x128xf32>
    %136 = math.exp %135 : vector<8x128xf32>
    %cst_41 = arith.constant 1.000000e+00 : f32
    %137 = vector.broadcast %cst_41 : f32 to vector<8x128xf32>
    %138 = arith.addf %137, %136 : vector<8x128xf32>
    %139 = arith.divf %137, %138 : vector<8x128xf32>
    %140 = vector.extract_strided_slice %133 {offsets = [0, 128], sizes = [8, 64], strides = [1, 1]} : vector<8x192xf32> to vector<8x64xf32>
    %141 = math.tanh %140 : vector<8x64xf32>
    %142 = vector.extract_strided_slice %139 {offsets = [0, 0], sizes = [8, 32], strides = [1, 1]} : vector<8x128xf32> to vector<8x32xf32>
    %143 = vector.extract_strided_slice %139 {offsets = [0, 32], sizes = [8, 32], strides = [1, 1]} : vector<8x128xf32> to vector<8x32xf32>
    %144 = vector.extract_strided_slice %139 {offsets = [0, 64], sizes = [8, 32], strides = [1, 1]} : vector<8x128xf32> to vector<8x32xf32>
    %145 = vector.extract_strided_slice %139 {offsets = [0, 96], sizes = [8, 32], strides = [1, 1]} : vector<8x128xf32> to vector<8x32xf32>
    %146 = vector.extract_strided_slice %141 {offsets = [0, 0], sizes = [8, 32], strides = [1, 1]} : vector<8x64xf32> to vector<8x32xf32>
    %147 = vector.extract_strided_slice %141 {offsets = [0, 32], sizes = [8, 32], strides = [1, 1]} : vector<8x64xf32> to vector<8x32xf32>
    %148 = arith.subf %146, %112 : vector<8x32xf32>
    %149 = arith.mulf %142, %148 : vector<8x32xf32>
    %150 = arith.addf %112, %149 : vector<8x32xf32>
    %151 = math.tanh %150 : vector<8x32xf32>
    %152 = arith.mulf %151, %143 : vector<8x32xf32>
    %153 = arith.subf %147, %126 : vector<8x32xf32>
    %154 = arith.mulf %144, %153 : vector<8x32xf32>
    %155 = arith.addf %126, %154 : vector<8x32xf32>
    %156 = math.tanh %155 : vector<8x32xf32>
    %157 = arith.mulf %156, %145 : vector<8x32xf32>
    %158 = arith.index_cast %c3_i32 : i32 to index
    %c0_42 = arith.constant 0 : index
    %c0_43 = arith.constant 0 : index
    %159 = vector.load %arg4[%158, %c0_42, %c0_43] : memref<7x8x64xf32, #tpu.memory_space<vmem>>, vector<1x8x32xf32>
    %160 = vector.shape_cast %159 : vector<1x8x32xf32> to vector<8x32xf32>
    %161 = vector.shape_cast %152 : vector<8x32xf32> to vector<1x8x32xf32>
    tpu.vector_store %arg4[%158, %c0_42, %c0_43], %161 {strides = array<i32>} : memref<7x8x64xf32, #tpu.memory_space<vmem>>, vector<1x8x32xf32>,
    %162 = arith.index_cast %c3_i32 : i32 to index
    %c0_44 = arith.constant 0 : index
    %c32_45 = arith.constant 32 : index
    %163 = vector.load %arg4[%162, %c0_44, %c32_45] : memref<7x8x64xf32, #tpu.memory_space<vmem>>, vector<1x8x32xf32>
    %164 = vector.shape_cast %163 : vector<1x8x32xf32> to vector<8x32xf32>
    %165 = vector.shape_cast %157 : vector<8x32xf32> to vector<1x8x32xf32>
    tpu.vector_store %arg4[%162, %c0_44, %c32_45], %165 {strides = array<i32>} : memref<7x8x64xf32, #tpu.memory_space<vmem>>, vector<1x8x32xf32>,
    %c2_i32_46 = arith.constant 2 : i32
    %166 = tpu.dynamic_rotate %157 by %c2_i32_46 dim 0 : vector<8x32xf32>, i32 -> vector<8x32xf32>
    %c4_i32 = arith.constant 4 : i32
    %167 = arith.index_cast %c4_i32 : i32 to index
    %c0_47 = arith.constant 0 : index
    %c0_48 = arith.constant 0 : index
    %168 = vector.load %arg1[%167, %c0_47, %c0_48] : memref<7x8x192xf32, #tpu.memory_space<vmem>>, vector<1x8x192xf32>
    %169 = vector.shape_cast %168 : vector<1x8x192xf32> to vector<8x192xf32>
    %cst_49 = arith.constant dense<0.000000e+00> : vector<8x192xf32>
    %170 = tpu.matmul %152, %3, %cst_49 {dimension_numbers = #tpu.dot_dimension_numbers<[1], [0], [0], [1], [0, 0, 1, 1], [], []>} : vector<8x32xf32>, vector<32x192xf32>, vector<8x192xf32> -> vector<8x192xf32>
    %171 = arith.addf %169, %170 : vector<8x192xf32>
    %cst_50 = arith.constant dense<0.000000e+00> : vector<8x192xf32>
    %172 = tpu.matmul %166, %4, %cst_50 {dimension_numbers = #tpu.dot_dimension_numbers<[1], [0], [0], [1], [0, 0, 1, 1], [], []>} : vector<8x32xf32>, vector<32x192xf32>, vector<8x192xf32> -> vector<8x192xf32>
    %173 = arith.addf %171, %172 : vector<8x192xf32>
    %174 = vector.extract_strided_slice %173 {offsets = [0, 0], sizes = [8, 128], strides = [1, 1]} : vector<8x192xf32> to vector<8x128xf32>
    %175 = arith.negf %174 : vector<8x128xf32>
    %176 = math.exp %175 : vector<8x128xf32>
    %cst_51 = arith.constant 1.000000e+00 : f32
    %177 = vector.broadcast %cst_51 : f32 to vector<8x128xf32>
    %178 = arith.addf %177, %176 : vector<8x128xf32>
    %179 = arith.divf %177, %178 : vector<8x128xf32>
    %180 = vector.extract_strided_slice %173 {offsets = [0, 128], sizes = [8, 64], strides = [1, 1]} : vector<8x192xf32> to vector<8x64xf32>
    %181 = math.tanh %180 : vector<8x64xf32>
    %182 = vector.extract_strided_slice %179 {offsets = [0, 0], sizes = [8, 32], strides = [1, 1]} : vector<8x128xf32> to vector<8x32xf32>
    %183 = vector.extract_strided_slice %179 {offsets = [0, 32], sizes = [8, 32], strides = [1, 1]} : vector<8x128xf32> to vector<8x32xf32>
    %184 = vector.extract_strided_slice %179 {offsets = [0, 64], sizes = [8, 32], strides = [1, 1]} : vector<8x128xf32> to vector<8x32xf32>
    %185 = vector.extract_strided_slice %179 {offsets = [0, 96], sizes = [8, 32], strides = [1, 1]} : vector<8x128xf32> to vector<8x32xf32>
    %186 = vector.extract_strided_slice %181 {offsets = [0, 0], sizes = [8, 32], strides = [1, 1]} : vector<8x64xf32> to vector<8x32xf32>
    %187 = vector.extract_strided_slice %181 {offsets = [0, 32], sizes = [8, 32], strides = [1, 1]} : vector<8x64xf32> to vector<8x32xf32>
    %188 = arith.subf %186, %152 : vector<8x32xf32>
    %189 = arith.mulf %182, %188 : vector<8x32xf32>
    %190 = arith.addf %152, %189 : vector<8x32xf32>
    %191 = math.tanh %190 : vector<8x32xf32>
    %192 = arith.mulf %191, %183 : vector<8x32xf32>
    %193 = arith.subf %187, %166 : vector<8x32xf32>
    %194 = arith.mulf %184, %193 : vector<8x32xf32>
    %195 = arith.addf %166, %194 : vector<8x32xf32>
    %196 = math.tanh %195 : vector<8x32xf32>
    %197 = arith.mulf %196, %185 : vector<8x32xf32>
    %198 = arith.index_cast %c4_i32 : i32 to index
    %c0_52 = arith.constant 0 : index
    %c0_53 = arith.constant 0 : index
    %199 = vector.load %arg4[%198, %c0_52, %c0_53] : memref<7x8x64xf32, #tpu.memory_space<vmem>>, vector<1x8x32xf32>
    %200 = vector.shape_cast %199 : vector<1x8x32xf32> to vector<8x32xf32>
    %201 = vector.shape_cast %192 : vector<8x32xf32> to vector<1x8x32xf32>
    tpu.vector_store %arg4[%198, %c0_52, %c0_53], %201 {strides = array<i32>} : memref<7x8x64xf32, #tpu.memory_space<vmem>>, vector<1x8x32xf32>,
    %202 = arith.index_cast %c4_i32 : i32 to index
    %c0_54 = arith.constant 0 : index
    %c32_55 = arith.constant 32 : index
    %203 = vector.load %arg4[%202, %c0_54, %c32_55] : memref<7x8x64xf32, #tpu.memory_space<vmem>>, vector<1x8x32xf32>
    %204 = vector.shape_cast %203 : vector<1x8x32xf32> to vector<8x32xf32>
    %205 = vector.shape_cast %197 : vector<8x32xf32> to vector<1x8x32xf32>
    tpu.vector_store %arg4[%202, %c0_54, %c32_55], %205 {strides = array<i32>} : memref<7x8x64xf32, #tpu.memory_space<vmem>>, vector<1x8x32xf32>,
    %c2_i32_56 = arith.constant 2 : i32
    %206 = tpu.dynamic_rotate %197 by %c2_i32_56 dim 0 : vector<8x32xf32>, i32 -> vector<8x32xf32>
    %c5_i32 = arith.constant 5 : i32
    %207 = arith.index_cast %c5_i32 : i32 to index
    %c0_57 = arith.constant 0 : index
    %c0_58 = arith.constant 0 : index
    %208 = vector.load %arg1[%207, %c0_57, %c0_58] : memref<7x8x192xf32, #tpu.memory_space<vmem>>, vector<1x8x192xf32>
    %209 = vector.shape_cast %208 : vector<1x8x192xf32> to vector<8x192xf32>
    %cst_59 = arith.constant dense<0.000000e+00> : vector<8x192xf32>
    %210 = tpu.matmul %192, %3, %cst_59 {dimension_numbers = #tpu.dot_dimension_numbers<[1], [0], [0], [1], [0, 0, 1, 1], [], []>} : vector<8x32xf32>, vector<32x192xf32>, vector<8x192xf32> -> vector<8x192xf32>
    %211 = arith.addf %209, %210 : vector<8x192xf32>
    %cst_60 = arith.constant dense<0.000000e+00> : vector<8x192xf32>
    %212 = tpu.matmul %206, %4, %cst_60 {dimension_numbers = #tpu.dot_dimension_numbers<[1], [0], [0], [1], [0, 0, 1, 1], [], []>} : vector<8x32xf32>, vector<32x192xf32>, vector<8x192xf32> -> vector<8x192xf32>
    %213 = arith.addf %211, %212 : vector<8x192xf32>
    %214 = vector.extract_strided_slice %213 {offsets = [0, 0], sizes = [8, 128], strides = [1, 1]} : vector<8x192xf32> to vector<8x128xf32>
    %215 = arith.negf %214 : vector<8x128xf32>
    %216 = math.exp %215 : vector<8x128xf32>
    %cst_61 = arith.constant 1.000000e+00 : f32
    %217 = vector.broadcast %cst_61 : f32 to vector<8x128xf32>
    %218 = arith.addf %217, %216 : vector<8x128xf32>
    %219 = arith.divf %217, %218 : vector<8x128xf32>
    %220 = vector.extract_strided_slice %213 {offsets = [0, 128], sizes = [8, 64], strides = [1, 1]} : vector<8x192xf32> to vector<8x64xf32>
    %221 = math.tanh %220 : vector<8x64xf32>
    %222 = vector.extract_strided_slice %219 {offsets = [0, 0], sizes = [8, 32], strides = [1, 1]} : vector<8x128xf32> to vector<8x32xf32>
    %223 = vector.extract_strided_slice %219 {offsets = [0, 32], sizes = [8, 32], strides = [1, 1]} : vector<8x128xf32> to vector<8x32xf32>
    %224 = vector.extract_strided_slice %219 {offsets = [0, 64], sizes = [8, 32], strides = [1, 1]} : vector<8x128xf32> to vector<8x32xf32>
    %225 = vector.extract_strided_slice %219 {offsets = [0, 96], sizes = [8, 32], strides = [1, 1]} : vector<8x128xf32> to vector<8x32xf32>
    %226 = vector.extract_strided_slice %221 {offsets = [0, 0], sizes = [8, 32], strides = [1, 1]} : vector<8x64xf32> to vector<8x32xf32>
    %227 = vector.extract_strided_slice %221 {offsets = [0, 32], sizes = [8, 32], strides = [1, 1]} : vector<8x64xf32> to vector<8x32xf32>
    %228 = arith.subf %226, %192 : vector<8x32xf32>
    %229 = arith.mulf %222, %228 : vector<8x32xf32>
    %230 = arith.addf %192, %229 : vector<8x32xf32>
    %231 = math.tanh %230 : vector<8x32xf32>
    %232 = arith.mulf %231, %223 : vector<8x32xf32>
    %233 = arith.subf %227, %206 : vector<8x32xf32>
    %234 = arith.mulf %224, %233 : vector<8x32xf32>
    %235 = arith.addf %206, %234 : vector<8x32xf32>
    %236 = math.tanh %235 : vector<8x32xf32>
    %237 = arith.mulf %236, %225 : vector<8x32xf32>
    %238 = arith.index_cast %c5_i32 : i32 to index
    %c0_62 = arith.constant 0 : index
    %c0_63 = arith.constant 0 : index
    %239 = vector.load %arg4[%238, %c0_62, %c0_63] : memref<7x8x64xf32, #tpu.memory_space<vmem>>, vector<1x8x32xf32>
    %240 = vector.shape_cast %239 : vector<1x8x32xf32> to vector<8x32xf32>
    %241 = vector.shape_cast %232 : vector<8x32xf32> to vector<1x8x32xf32>
    tpu.vector_store %arg4[%238, %c0_62, %c0_63], %241 {strides = array<i32>} : memref<7x8x64xf32, #tpu.memory_space<vmem>>, vector<1x8x32xf32>,
    %242 = arith.index_cast %c5_i32 : i32 to index
    %c0_64 = arith.constant 0 : index
    %c32_65 = arith.constant 32 : index
    %243 = vector.load %arg4[%242, %c0_64, %c32_65] : memref<7x8x64xf32, #tpu.memory_space<vmem>>, vector<1x8x32xf32>
    %244 = vector.shape_cast %243 : vector<1x8x32xf32> to vector<8x32xf32>
    %245 = vector.shape_cast %237 : vector<8x32xf32> to vector<1x8x32xf32>
    tpu.vector_store %arg4[%242, %c0_64, %c32_65], %245 {strides = array<i32>} : memref<7x8x64xf32, #tpu.memory_space<vmem>>, vector<1x8x32xf32>,
    %c2_i32_66 = arith.constant 2 : i32
    %246 = tpu.dynamic_rotate %237 by %c2_i32_66 dim 0 : vector<8x32xf32>, i32 -> vector<8x32xf32>
    %c6_i32 = arith.constant 6 : i32
    %247 = arith.index_cast %c6_i32 : i32 to index
    %c0_67 = arith.constant 0 : index
    %c0_68 = arith.constant 0 : index
    %248 = vector.load %arg1[%247, %c0_67, %c0_68] : memref<7x8x192xf32, #tpu.memory_space<vmem>>, vector<1x8x192xf32>
    %249 = vector.shape_cast %248 : vector<1x8x192xf32> to vector<8x192xf32>
    %cst_69 = arith.constant dense<0.000000e+00> : vector<8x192xf32>
    %250 = tpu.matmul %232, %3, %cst_69 {dimension_numbers = #tpu.dot_dimension_numbers<[1], [0], [0], [1], [0, 0, 1, 1], [], []>} : vector<8x32xf32>, vector<32x192xf32>, vector<8x192xf32> -> vector<8x192xf32>
    %251 = arith.addf %249, %250 : vector<8x192xf32>
    %cst_70 = arith.constant dense<0.000000e+00> : vector<8x192xf32>
    %252 = tpu.matmul %246, %4, %cst_70 {dimension_numbers = #tpu.dot_dimension_numbers<[1], [0], [0], [1], [0, 0, 1, 1], [], []>} : vector<8x32xf32>, vector<32x192xf32>, vector<8x192xf32> -> vector<8x192xf32>
    %253 = arith.addf %251, %252 : vector<8x192xf32>
    %254 = vector.extract_strided_slice %253 {offsets = [0, 0], sizes = [8, 128], strides = [1, 1]} : vector<8x192xf32> to vector<8x128xf32>
    %255 = arith.negf %254 : vector<8x128xf32>
    %256 = math.exp %255 : vector<8x128xf32>
    %cst_71 = arith.constant 1.000000e+00 : f32
    %257 = vector.broadcast %cst_71 : f32 to vector<8x128xf32>
    %258 = arith.addf %257, %256 : vector<8x128xf32>
    %259 = arith.divf %257, %258 : vector<8x128xf32>
    %260 = vector.extract_strided_slice %253 {offsets = [0, 128], sizes = [8, 64], strides = [1, 1]} : vector<8x192xf32> to vector<8x64xf32>
    %261 = math.tanh %260 : vector<8x64xf32>
    %262 = vector.extract_strided_slice %259 {offsets = [0, 0], sizes = [8, 32], strides = [1, 1]} : vector<8x128xf32> to vector<8x32xf32>
    %263 = vector.extract_strided_slice %259 {offsets = [0, 32], sizes = [8, 32], strides = [1, 1]} : vector<8x128xf32> to vector<8x32xf32>
    %264 = vector.extract_strided_slice %259 {offsets = [0, 64], sizes = [8, 32], strides = [1, 1]} : vector<8x128xf32> to vector<8x32xf32>
    %265 = vector.extract_strided_slice %259 {offsets = [0, 96], sizes = [8, 32], strides = [1, 1]} : vector<8x128xf32> to vector<8x32xf32>
    %266 = vector.extract_strided_slice %261 {offsets = [0, 0], sizes = [8, 32], strides = [1, 1]} : vector<8x64xf32> to vector<8x32xf32>
    %267 = vector.extract_strided_slice %261 {offsets = [0, 32], sizes = [8, 32], strides = [1, 1]} : vector<8x64xf32> to vector<8x32xf32>
    %268 = arith.subf %266, %232 : vector<8x32xf32>
    %269 = arith.mulf %262, %268 : vector<8x32xf32>
    %270 = arith.addf %232, %269 : vector<8x32xf32>
    %271 = math.tanh %270 : vector<8x32xf32>
    %272 = arith.mulf %271, %263 : vector<8x32xf32>
    %273 = arith.subf %267, %246 : vector<8x32xf32>
    %274 = arith.mulf %264, %273 : vector<8x32xf32>
    %275 = arith.addf %246, %274 : vector<8x32xf32>
    %276 = math.tanh %275 : vector<8x32xf32>
    %277 = arith.mulf %276, %265 : vector<8x32xf32>
    %278 = arith.index_cast %c6_i32 : i32 to index
    %c0_72 = arith.constant 0 : index
    %c0_73 = arith.constant 0 : index
    %279 = vector.load %arg4[%278, %c0_72, %c0_73] : memref<7x8x64xf32, #tpu.memory_space<vmem>>, vector<1x8x32xf32>
    %280 = vector.shape_cast %279 : vector<1x8x32xf32> to vector<8x32xf32>
    %281 = vector.shape_cast %272 : vector<8x32xf32> to vector<1x8x32xf32>
    tpu.vector_store %arg4[%278, %c0_72, %c0_73], %281 {strides = array<i32>} : memref<7x8x64xf32, #tpu.memory_space<vmem>>, vector<1x8x32xf32>,
    %282 = arith.index_cast %c6_i32 : i32 to index
    %c0_74 = arith.constant 0 : index
    %c32_75 = arith.constant 32 : index
    %283 = vector.load %arg4[%282, %c0_74, %c32_75] : memref<7x8x64xf32, #tpu.memory_space<vmem>>, vector<1x8x32xf32>
    %284 = vector.shape_cast %283 : vector<1x8x32xf32> to vector<8x32xf32>
    %285 = vector.shape_cast %277 : vector<8x32xf32> to vector<1x8x32xf32>
    tpu.vector_store %arg4[%282, %c0_74, %c32_75], %285 {strides = array<i32>} : memref<7x8x64xf32, #tpu.memory_space<vmem>>, vector<1x8x32xf32>,
    %c2_i32_76 = arith.constant 2 : i32
    %286 = tpu.dynamic_rotate %277 by %c2_i32_76 dim 0 : vector<8x32xf32>, i32 -> vector<8x32xf32>
    %c7_i32 = arith.constant 7 : i32
    %c0_77 = arith.constant 0 : index
    %c0_78 = arith.constant 0 : index
    %287 = vector.load %arg5[%c0_77, %c0_78] : memref<8x32xf32, #tpu.memory_space<vmem>>, vector<8x32xf32>
    tpu.vector_store %arg5[%c0_77, %c0_78], %272 {strides = array<i32>} : memref<8x32xf32, #tpu.memory_space<vmem>>, vector<8x32xf32>,
    %c0_79 = arith.constant 0 : index
    %c0_80 = arith.constant 0 : index
    %288 = vector.load %arg6[%c0_79, %c0_80] : memref<8x32xf32, #tpu.memory_space<vmem>>, vector<8x32xf32>
    tpu.vector_store %arg6[%c0_79, %c0_80], %286 {strides = array<i32>} : memref<8x32xf32, #tpu.memory_space<vmem>>, vector<8x32xf32>,
    return
  }
  func.func @transform_0(%arg0: i32) -> (i32, i32, i32) {
    %c0_i32 = arith.constant 0 : i32
    %c0_i32_0 = arith.constant 0 : i32
    %c0_i32_1 = arith.constant 0 : i32
    return %arg0, %c0_i32, %c0_i32_0 : i32, i32, i32
  }
  func.func @transform_1(%arg0: i32) -> (i32, i32) {
    %c0_i32 = arith.constant 0 : i32
    %c0_i32_0 = arith.constant 0 : i32
    %c0_i32_1 = arith.constant 0 : i32
    return %c0_i32, %c0_i32_0 : i32, i32
  }
  func.func @transform_2(%arg0: i32) -> (i32, i32) {
    %c0_i32 = arith.constant 0 : i32
    %c0_i32_0 = arith.constant 0 : i32
    %c0_i32_1 = arith.constant 0 : i32
    return %c0_i32, %c0_i32_0 : i32, i32
  }
  func.func @transform_3(%arg0: i32) -> (i32, i32, i32) {
    %c0_i32 = arith.constant 0 : i32
    %c0_i32_0 = arith.constant 0 : i32
    %c0_i32_1 = arith.constant 0 : i32
    return %arg0, %c0_i32, %c0_i32_0 : i32, i32, i32
  }
}

</mosaic_0001>

<bundles_post_ra>
// kernel: tpu_custom_call.1
= control target key start
LH: loop header
LB: loop body
LE: loop exit
PB: predicated region body
PF: predicated region fallthrough
CT: control target
= control target key end

     0   :  { %8 = vsyncpa [#allocation5], 0  ;;  %s1731_s0 = inlined_call_operand.hbm [shape: f32[7,8,192], index: 0, kind: input, shape index: {}]   ;;  %s1732_s1 = inlined_call_operand.hbm [shape: f32[32,192], index: 1, kind: input, shape index: {}]   ;;  %s1733_s2 = inlined_call_operand.hbm [shape: f32[32,192], index: 2, kind: input, shape index: {}]   ;;  %s1734_s3 = inlined_call_operand.hbm [shape: f32[7,8,64], index: 3, kind: output, shape index: {}]  }
   0x1   :  { %9 = vsyncpa [#allocation8], 0 }
   0x2   :  { %10 = vsyncpa [#allocation6], 0  ;;  %s28_s14 = sshll.u32 %s1732_s1, 4  ;;  %s1371_s15 = smov [#allocation7]   ;;  %s29_s14 = int_to_ptr.hbm [resolvable:$true] %s28_s14 }
   0x3   :  { %s30_s16 = sshll.u32 %s1371_s15, 4  ;;  %s15_s19 = sshll.u32 %s1731_s0, 4  ;;  %s31_s16 = int_to_ptr.vmem [resolvable:$true] %s30_s16  ;;  %s16_s19 = int_to_ptr.hbm [resolvable:$true] %s15_s19 }
   0x4   :  { %s1372_s20 = smov 256   ;;  %s1373_s21 = smov 16  }
   0x5   :  { %36 = dma.hbm_to_vmem [thread:$0]  %s29_s14, 1024, %s31_s16, [#allocation8], %s1372_s20, %s1372_s20, %s1373_s21  }
   0x6   :  { %s1374_s22 = smov [#allocation4]   ;;  %s41_s26 = sshll.u32 %s1733_s2, 4  ;;  %s42_s26 = int_to_ptr.hbm [resolvable:$true] %s41_s26 }
   0x7   :  { %s17_s23 = sshll.u32 %s1374_s22, 4  ;;  %s1375_s1 = smov [#allocation9]   ;;  %s18_s23 = int_to_ptr.vmem [resolvable:$true] %s17_s23 }
   0x8   :  { %23 = dma.hbm_to_vmem [thread:$0]  %s16_s19, 1792, %s18_s23, [#allocation5], %s1372_s20, %s1372_s20, %s1373_s21  }
   0x9   :  { %s43_s27 = sshll.u32 %s1375_s1, 4  ;;  %s44_s27 = int_to_ptr.vmem [resolvable:$true] %s43_s27 }
   0xa   :  { %49 = dma.hbm_to_vmem [thread:$0]  %s42_s26, 1024, %s44_s27, [#allocation8], %s1372_s20, %s1372_s20, %s1373_s21  }
   0xb   :  { %1365 = dma.done.wait [#allocation5], 1792  }
   0xc   :  { %1366 = vsyncadd [#allocation5], 4294965504 }
   0xd   :  { %1367 = dma.done.wait [#allocation8], 2048  }
   0xe   :  { %1368 = vsyncadd [#allocation8], 4294965248  ;;  %vm66_vm0 = vcmask 261120   ;;  %v1376_v0 = vmov 0.0   ;;  %v1414_v1 = vld [vmem:[#allocation9 + $0x30] sm:$0xff]  ;;  %v1416_v2 = vld [vmem:[#allocation9 + $0x38] sm:$0xff] }
   0xf   :  { %68 = vst.msk [vmem:[#allocation3] sm:$0xff] %vm66_vm0, %v1376_v0  ;;  %v1418_v3 = vld [vmem:[#allocation9 + $0x20] sm:$0xff]  ;;  %150 = vmatpush.msra.mxu2 %v1414_v1  ;;  %170 = vmatpush.msra.mxu3 %v1416_v2  ;;  %v1422_v4 = vld [vmem:[#allocation9 + $0x28] sm:$0xff]  ;;  %v1424_v5 = vld [vmem:[#allocation7 + $0x30] sm:$0xff]  ;;  %s1377_s0 = smov 32   ;;  %s1378_s2 = smov 96  }
  0x10   :  { %67 = vst.msk [vmem:[#allocation2] sm:$0xff] %vm66_vm0, %v1376_v0  ;;  %v1426_v6 = vld [vmem:[#allocation7 + $0x38] sm:$0xff]  ;;  %105 = vmatpush.msra.mxu0 %v1424_v5  ;;  %v1430_v7 = vld [vmem:[#allocation9 + $0x10] sm:$0xff]  ;;  %v1434_v9 = vld [vmem:[#allocation7 + $0x20] sm:$0xff]  ;;  %s1379_s28 = smov 64   ;;  %s1380_s29 = smov [#allocation10]  }
  0x11   :  { %125 = vmatpush.msra.mxu1 %v1426_v6  ;;  %v1432_v8 = vld [vmem:[#allocation9 + $0x18] sm:$0xff]  ;;  %151 = vmatpush.msra.mxu2 %v1418_v3  ;;  %v1438_v10 = vld [vmem:[#allocation7 + $0x28] sm:$0xff]  ;;  %v1440_v11 = vld [vmem:[#allocation9] sm:$0xff]  ;;  %s1136_s30 = sshll.u32 %s1380_s29, 4  ;;  %s1138_s6 = sshll.u32 %s1734_s3, 4  ;;  %s1137_s30 = int_to_ptr.vmem [resolvable:$true] %s1136_s30  ;;  %s1139_s6 = int_to_ptr.hbm [resolvable:$true] %s1138_s6 }
  0x12   :  { %171 = vmatpush.msra.mxu3 %v1422_v4  ;;  %106 = vmatpush.msra.mxu0 %v1434_v9  ;;  %v1444_v12 = vld [vmem:[#allocation9 + $0x8] sm:$0xff]  ;;  %v1446_v13 = vld [vmem:[#allocation7 + $0x10] sm:$0xff]  ;;  %v1448_v14 = vld [vmem:[#allocation7 + $0x18] sm:$0xff]  ;;  %s1381_s7 = smov 128   ;;  %s1382_s8 = smov 8  }
  0x13   :  { %126 = vmatpush.msra.mxu1 %v1438_v10  ;;  %152 = vmatpush.msra.mxu2 %v1430_v7  ;;  %v1456_v16 = vld [vmem:[#allocation7] sm:$0xff]  ;;  %v1458_v17 = vld [vmem:[#allocation7 + $0x8] sm:$0xff]  ;;  %v87_v19 = vld [vmem:[#allocation4] sm:$0xff] }
  0x14   :  { %172 = vmatpush.msra.mxu3 %v1432_v8  ;;  %107 = vmatpush.msra.mxu0 %v1446_v13  ;;  %v88_v20 = vld [vmem:[#allocation4 + $0x8] sm:$0xff]  ;;  %v237_v59 = vld [vmem:[#allocation4 + $0x10] sm:$0xff]  ;;  %v238_v61 = vld [vmem:[#allocation4 + $0x18] sm:$0xff] }
  0x15   :  { %127 = vmatpush.msra.mxu1 %v1448_v14  ;;  %153 = vmatpush.msra.mxu2 %v1440_v11 }
  0x16   :  { %v1452_v15 = vld [vmem:[#allocation3] sm:$0xff]  ;;  %173 = vmatpush.msra.mxu3 %v1444_v12  ;;  %108 = vmatpush.msra.mxu0 %v1456_v16 }
  0x17   :  { %v1462_v18 = vld [vmem:[#allocation2] sm:$0xff]  ;;  %1154 = vmatmul.msk.f32.vlgmr.msra.gmra.mxu2 %vm66_vm0, %v1452_v15  ;;  %1155 = vmatmul.msk.f32.vlgmr.msra.gmra.mxu3 %vm66_vm0, %v1452_v15 }
  0x18   :  { %128 = vmatpush.msra.mxu1 %v1458_v17  ;;  %1152 = vmatmul.msk.f32.vlgmr.msra.gmra.mxu0 %vm66_vm0, %v1462_v18 }
  0x19   :  { %1153 = vmatmul.msk.f32.vlgmr.msra.gmra.mxu1 %vm66_vm0, %v1462_v18  ;;  %209 = vrot.lane.b32.xlu0 %v1452_v15, %s1377_s0 }
  0x1a   :  { %254 = vmatpush.msrb.mxu0 %v1424_v5  ;;  %274 = vmatpush.msrb.mxu1 %v1426_v6 }
  0x1b   :  { %319 = vmatpush.msrb.mxu3 %v1416_v2  ;;  %299 = vmatpush.msrb.mxu2 %v1414_v1 }
  0x1c   :  { %255 = vmatpush.msrb.mxu0 %v1434_v9  ;;  %275 = vmatpush.msrb.mxu1 %v1438_v10 }
  0x1d   :  { %320 = vmatpush.msrb.mxu3 %v1422_v4  ;;  %300 = vmatpush.msrb.mxu2 %v1418_v3 }
  0x1e   :  { %256 = vmatpush.msrb.mxu0 %v1446_v13  ;;  %276 = vmatpush.msrb.mxu1 %v1448_v14 }
  0x1f   :  { %321 = vmatpush.msrb.mxu3 %v1432_v8  ;;  %301 = vmatpush.msrb.mxu2 %v1430_v7 }
  0x20   :  { %257 = vmatpush.msrb.mxu0 %v1456_v16  ;;  %277 = vmatpush.msrb.mxu1 %v1458_v17 }
  0x21   :  { %322 = vmatpush.msrb.mxu3 %v1444_v12  ;;  %302 = vmatpush.msrb.mxu2 %v1440_v11 }
  0x22   :  { %403 = vmatpush.msra.mxu0 %v1424_v5  ;;  %423 = vmatpush.msra.mxu1 %v1426_v6 }
  0x23   :  { %468 = vmatpush.msra.mxu3 %v1416_v2  ;;  %448 = vmatpush.msra.mxu2 %v1414_v1 }
  0x24   :  { %404 = vmatpush.msra.mxu0 %v1434_v9  ;;  %424 = vmatpush.msra.mxu1 %v1438_v10 }
  0x25   :  { %469 = vmatpush.msra.mxu3 %v1422_v4  ;;  %449 = vmatpush.msra.mxu2 %v1418_v3 }
  0x26   :  { %405 = vmatpush.msra.mxu0 %v1446_v13  ;;  %425 = vmatpush.msra.mxu1 %v1448_v14 }
  0x27   :  { %470 = vmatpush.msra.mxu3 %v1432_v8  ;;  %450 = vmatpush.msra.mxu2 %v1430_v7 }
  0x28   :  { %406 = vmatpush.msra.mxu0 %v1456_v16  ;;  %426 = vmatpush.msra.mxu1 %v1458_v17 }
  0x29   :  { %471 = vmatpush.msra.mxu3 %v1444_v12  ;;  %451 = vmatpush.msra.mxu2 %v1440_v11 }
  0x8b   :  { %v210_v30 = vpop.permute.xlu0 %209 }
  0x95   :  { %v110_v21 = vpop.f32.mrf.mxu0 }
  0x96   :  { %v130_v22 = vpop.f32.mrf.mxu1  ;;  %v133_v23 = vadd.f32 %v110_v21, %v87_v19 }
  0x97   :  { %v134_v24 = vadd.f32 %v130_v22, %v88_v20 }
  0x9a   :  { %v155_v25 = vpop.f32.mrf.mxu2  ;;  %v175_v26 = vpop.f32.mrf.mxu3 }
  0x9b   :  { %v178_v27 = vadd.f32 %v155_v25, %v133_v23  ;;  %v179_v28 = vadd.f32 %v175_v26, %v134_v24 }
  0x9d   :  { %v1156_v29 = vmul.f32 -1.442695, %v178_v27  ;;  %1199 = vtanh.f32 %v179_v28 }
  0x9f   :  { %1201 = vpow2.f32 %v1156_v29 }
  0xa3   :  { %v1200_v31 = vpop.eup %1199 }
  0xa4   :  { %v212_v32 = vsub.f32 %v1200_v31, %v210_v30  ;;  %v200_v45 = vsub.f32 %v1200_v31, %v1462_v18 }
  0xa5   :  { %v1202_v33 = vpop.eup %1201 }
  0xa6   :  { %v183_v34 = vadd.f32 1.0, %v1202_v33  ;;  %214 = vrot.lane.b32.xlu0 %v212_v32, %s1377_s0 }
  0xa8   :  { %1203 = vrcp.f32 %v183_v34  ;;  %v195_v37 = vand.u32 2147483648, %v183_v34  ;;  %vm189_vm1 = vweird.f32 %v183_v34  ;;  %v193_v39 = vand.u32 2147483647, %v183_v34 }
  0xaa   :  { %v196_v41 = vor.u32 1.1754944e-38, %v195_v37  ;;  %vm194_vm4 = vcmp.eq.f32.partialorder %v193_v39, 8.507059e+37 }
  0xae   :  { %v1204_v35 = vpop.eup %1203 }
  0xaf   :  { %v185_v36 = vmul.f32 %v1204_v35, %v183_v34  ;;  %vm190_vm2 = vweird.f32 %v1204_v35 }
  0xb0   :  { %vm191_vm3 = vmor %vm189_vm1, %vm190_vm2 }
  0xb1   :  { %v186_v38 = vsub.f32 1.0, %v185_v36 }
  0xb3   :  { %v187_v40 = vmul.f32 %v1204_v35, %v186_v38 }
  0xb5   :  { %v188_v42 = vadd.f32 %v1204_v35, %v187_v40 }
  0xb7   :  { %v192_v43 = vsel %vm191_vm3, %v1204_v35, %v188_v42 }
  0xb8   :  { %v197_v44 = vsel %vm194_vm4, %v196_v41, %v192_v43 }
  0xb9   :  { %205 = vrot.lane.b32.xlu2 %v197_v44, %s1378_s2  ;;  %v201_v46 = vmul.f32 %v200_v45, %v197_v44 }
  0xbb   :  { %v202_v47 = vadd.f32 %v201_v46, %v1462_v18 }
  0xbd   :  { %1205 = vtanh.f32 %v202_v47 }
  0xc3   :  { %v1206_v48 = vpop.eup %1205 }
 0x113   :  { %v206_v49 = vpop.permute.xlu2 %205 }
 0x114   :  { %v1512_v50 = vmul.f32 %v1206_v48, %v206_v49 }
 0x116   :  { %228 = vst.msk [vmem:[#allocation10] sm:$0xff] %vm66_vm0, %v1512_v50  ;;  %1157 = vmatmul.msk.f32.vlgmr.msrb.gmra.mxu0 %vm66_vm0, %v1512_v50  ;;  %1158 = vmatmul.msk.f32.vlgmr.msrb.gmra.mxu1 %vm66_vm0, %v1512_v50 }
 0x117   :  { %552 = vmatpush.msrb.mxu0 %v1424_v5  ;;  %572 = vmatpush.msrb.mxu1 %v1426_v6 }
 0x118   :  { %v215_v51 = vpop.permute.xlu0 %214 }
 0x119   :  { %v217_v52 = vmul.f32 %v215_v51, %v197_v44  ;;  %553 = vmatpush.msrb.mxu0 %v1434_v9  ;;  %573 = vmatpush.msrb.mxu1 %v1438_v10  ;;  %v386_v51 = vld [vmem:[#allocation4 + $0x20] sm:$0xff] }
 0x11b   :  { %219 = vrot.lane.b32.xlu1 %v217_v52, %s1379_s28  ;;  %554 = vmatpush.msrb.mxu0 %v1446_v13 }
 0x11c   :  { %574 = vmatpush.msrb.mxu1 %v1448_v14 }
 0x11d   :  { %555 = vmatpush.msrb.mxu0 %v1456_v16 }
 0x11e   :  { %575 = vmatpush.msrb.mxu1 %v1458_v17 }
 0x123   :  { %224 = vrot.lane.b32.xlu1 %v197_v44, %s1377_s0 }
 0x18d   :  { %v220_v53 = vpop.permute.xlu1 %219 }
 0x18e   :  { %v222_v54 = vadd.f32 %v220_v53, %v1452_v15  ;;  %v387_v53 = vld [vmem:[#allocation4 + $0x28] sm:$0xff] }
 0x190   :  { %1207 = vtanh.f32 %v222_v54 }
 0x193   :  { %v259_v60 = vpop.f32.mrf.mxu0  ;;  %v279_v62 = vpop.f32.mrf.mxu1 }
 0x194   :  { %v282_v63 = vadd.f32 %v259_v60, %v237_v59  ;;  %v283_v0 = vadd.f32 %v279_v62, %v238_v61 }
 0x195   :  { %v225_v55 = vpop.permute.xlu1 %224 }
 0x196   :  { %v1208_v56 = vpop.eup %1207 }
 0x197   :  { %v1531_v57 = vmul.f32 %v1208_v56, %v225_v55 }
 0x199   :  { %v1534_v58 = vrot.slane %v1531_v57, 6 }
 0x19b   :  { %358 = vrot.lane.b32.xlu2 %v1534_v58, %s1377_s0  ;;  %1159 = vmatmul.msk.f32.vlgmr.msrb.gmra.mxu2 %vm66_vm0, %v1534_v58 }
 0x19c   :  { %1160 = vmatmul.msk.f32.vlgmr.msrb.gmra.mxu3 %vm66_vm0, %v1534_v58  ;;  %597 = vmatpush.msrb.mxu2 %v1414_v1 }
 0x19d   :  { %617 = vmatpush.msrb.mxu3 %v1416_v2 }
 0x19e   :  { %598 = vmatpush.msrb.mxu2 %v1418_v3 }
 0x19f   :  { %618 = vmatpush.msrb.mxu3 %v1422_v4 }
 0x1a0   :  { %599 = vmatpush.msrb.mxu2 %v1430_v7 }
 0x1a1   :  { %619 = vmatpush.msrb.mxu3 %v1432_v8 }
 0x1a2   :  { %600 = vmatpush.msrb.mxu2 %v1440_v11 }
 0x1a3   :  { %620 = vmatpush.msrb.mxu3 %v1444_v12 }
 0x1f5   :  { %v359_v23 = vpop.permute.xlu2 %358 }
 0x21e   :  { %v304_v15 = vpop.f32.mrf.mxu2 }
 0x21f   :  { %v327_v18 = vadd.f32 %v304_v15, %v282_v63  ;;  %v324_v19 = vpop.f32.mrf.mxu3 }
 0x220   :  { %v328_v20 = vadd.f32 %v324_v19, %v283_v0 }
 0x221   :  { %v1161_v21 = vmul.f32 -1.442695, %v327_v18 }
 0x222   :  { %1209 = vtanh.f32 %v328_v20 }
 0x223   :  { %1211 = vpow2.f32 %v1161_v21 }
 0x228   :  { %v1210_v22 = vpop.eup %1209 }
 0x229   :  { %v1212_v24 = vpop.eup %1211  ;;  %v361_v25 = vsub.f32 %v1210_v22, %v359_v23  ;;  %v349_v39 = vsub.f32 %v1210_v22, %v1512_v50 }
 0x22a   :  { %v332_v26 = vadd.f32 1.0, %v1212_v24 }
 0x22b   :  { %363 = vrot.lane.b32.xlu0 %v361_v25, %s1377_s0 }
 0x22c   :  { %1213 = vrcp.f32 %v332_v26  ;;  %v344_v30 = vand.u32 2147483648, %v332_v26  ;;  %v342_v32 = vand.u32 2147483647, %v332_v26  ;;  %vm338_vm6 = vweird.f32 %v332_v26 }
 0x22e   :  { %v345_v34 = vor.u32 1.1754944e-38, %v344_v30  ;;  %vm343_vm8 = vcmp.eq.f32.partialorder %v342_v32, 8.507059e+37 }
 0x232   :  { %v1214_v27 = vpop.eup %1213 }
 0x233   :  { %v334_v28 = vmul.f32 %v1214_v27, %v332_v26  ;;  %vm339_vm5 = vweird.f32 %v1214_v27 }
 0x234   :  { %vm340_vm7 = vmor %vm338_vm6, %vm339_vm5 }
 0x235   :  { %v335_v29 = vsub.f32 1.0, %v334_v28 }
 0x237   :  { %v336_v31 = vmul.f32 %v1214_v27, %v335_v29 }
 0x239   :  { %v337_v33 = vadd.f32 %v1214_v27, %v336_v31 }
 0x23b   :  { %v341_v35 = vsel %vm340_vm7, %v1214_v27, %v337_v33 }
 0x23c   :  { %v346_v36 = vsel %vm343_vm8, %v345_v34, %v341_v35 }
 0x23d   :  { %354 = vrot.lane.b32.xlu0 %v346_v36, %s1378_s2  ;;  %373 = vrot.lane.b32.xlu2 %v346_v36, %s1377_s0  ;;  %v350_v40 = vmul.f32 %v349_v39, %v346_v36 }
 0x23f   :  { %v351_v41 = vadd.f32 %v350_v40, %v1512_v50 }
 0x241   :  { %1215 = vtanh.f32 %v351_v41 }
 0x247   :  { %v1216_v42 = vpop.eup %1215 }
 0x297   :  { %v374_v48 = vpop.permute.xlu2 %373 }
 0x29d   :  { %v364_v37 = vpop.permute.xlu0 %363 }
 0x29e   :  { %v366_v38 = vmul.f32 %v364_v37, %v346_v36 }
 0x2a0   :  { %368 = vrot.lane.b32.xlu1 %v366_v38, %s1379_s28 }
 0x2af   :  { %v355_v43 = vpop.permute.xlu0 %354 }
 0x2b0   :  { %v1556_v44 = vmul.f32 %v1216_v42, %v355_v43 }
 0x2b2   :  { %378 = vst.msk [vmem:[#allocation10 + $0x8] sm:$0xff] %vm66_vm0, %v1556_v44  ;;  %1162 = vmatmul.msk.f32.vlgmr.msra.gmra.mxu0 %vm66_vm0, %v1556_v44  ;;  %1163 = vmatmul.msk.f32.vlgmr.msra.gmra.mxu1 %vm66_vm0, %v1556_v44 }
 0x2b3   :  { %701 = vmatpush.msra.mxu0 %v1424_v5  ;;  %721 = vmatpush.msra.mxu1 %v1426_v6 }
 0x2b5   :  { %702 = vmatpush.msra.mxu0 %v1434_v9  ;;  %722 = vmatpush.msra.mxu1 %v1438_v10 }
 0x2b7   :  { %703 = vmatpush.msra.mxu0 %v1446_v13  ;;  %723 = vmatpush.msra.mxu1 %v1448_v14 }
 0x2b9   :  { %704 = vmatpush.msra.mxu0 %v1456_v16  ;;  %724 = vmatpush.msra.mxu1 %v1458_v17 }
 0x312   :  { %v369_v45 = vpop.permute.xlu1 %368 }
 0x313   :  { %v371_v46 = vadd.f32 %v369_v45, %v1534_v58 }
 0x315   :  { %1217 = vtanh.f32 %v371_v46  ;;  %v536_v46 = vld [vmem:[#allocation4 + $0x38] sm:$0xff] }
 0x31b   :  { %v1218_v47 = vpop.eup %1217 }
 0x31c   :  { %v1573_v49 = vmul.f32 %v1218_v47, %v374_v48 }
 0x31e   :  { %v1576_v50 = vrot.slane %v1573_v49, 6 }
 0x320   :  { %507 = vrot.lane.b32.xlu1 %v1576_v50, %s1377_s0  ;;  %1164 = vmatmul.msk.f32.vlgmr.msra.gmra.mxu2 %vm66_vm0, %v1576_v50 }
 0x321   :  { %1165 = vmatmul.msk.f32.vlgmr.msra.gmra.mxu3 %vm66_vm0, %v1576_v50  ;;  %746 = vmatpush.msra.mxu2 %v1414_v1 }
 0x322   :  { %766 = vmatpush.msra.mxu3 %v1416_v2 }
 0x323   :  { %747 = vmatpush.msra.mxu2 %v1418_v3 }
 0x324   :  { %767 = vmatpush.msra.mxu3 %v1422_v4 }
 0x325   :  { %748 = vmatpush.msra.mxu2 %v1430_v7 }
 0x326   :  { %768 = vmatpush.msra.mxu3 %v1432_v8 }
 0x327   :  { %749 = vmatpush.msra.mxu2 %v1440_v11 }
 0x328   :  { %769 = vmatpush.msra.mxu3 %v1444_v12 }
 0x32f   :  { %v408_v52 = vpop.f32.mrf.mxu0  ;;  %v428_v54 = vpop.f32.mrf.mxu1 }
 0x330   :  { %v431_v55 = vadd.f32 %v408_v52, %v386_v51  ;;  %v432_v56 = vadd.f32 %v428_v54, %v387_v53 }
 0x392   :  { %v508_v0 = vpop.permute.xlu1 %507 }
 0x3a3   :  { %v453_v58 = vpop.f32.mrf.mxu2 }
 0x3a4   :  { %v476_v59 = vadd.f32 %v453_v58, %v431_v55  ;;  %v473_v60 = vpop.f32.mrf.mxu3 }
 0x3a5   :  { %v477_v61 = vadd.f32 %v473_v60, %v432_v56 }
 0x3a6   :  { %v1166_v62 = vmul.f32 -1.442695, %v476_v59 }
 0x3a7   :  { %1219 = vtanh.f32 %v477_v61 }
 0x3a8   :  { %1221 = vpow2.f32 %v1166_v62 }
 0x3ad   :  { %v1220_v63 = vpop.eup %1219 }
 0x3ae   :  { %v1222_v15 = vpop.eup %1221  ;;  %v510_v18 = vsub.f32 %v1220_v63, %v508_v0  ;;  %v498_v32 = vsub.f32 %v1220_v63, %v1556_v44 }
 0x3af   :  { %v481_v19 = vadd.f32 1.0, %v1222_v15 }
 0x3b0   :  { %512 = vrot.lane.b32.xlu2 %v510_v18, %s1377_s0 }
 0x3b1   :  { %1223 = vrcp.f32 %v481_v19  ;;  %v493_v23 = vand.u32 2147483648, %v481_v19  ;;  %v491_v25 = vand.u32 2147483647, %v481_v19  ;;  %vm487_vm10 = vweird.f32 %v481_v19 }
 0x3b3   :  { %v494_v27 = vor.u32 1.1754944e-38, %v493_v23  ;;  %vm492_vm12 = vcmp.eq.f32.partialorder %v491_v25, 8.507059e+37 }
 0x3b7   :  { %v1224_v20 = vpop.eup %1223 }
 0x3b8   :  { %v483_v21 = vmul.f32 %v1224_v20, %v481_v19  ;;  %vm488_vm9 = vweird.f32 %v1224_v20 }
 0x3b9   :  { %vm489_vm11 = vmor %vm487_vm10, %vm488_vm9 }
 0x3ba   :  { %v484_v22 = vsub.f32 1.0, %v483_v21 }
 0x3bc   :  { %v485_v24 = vmul.f32 %v1224_v20, %v484_v22 }
 0x3be   :  { %v486_v26 = vadd.f32 %v1224_v20, %v485_v24 }
 0x3c0   :  { %v490_v28 = vsel %vm489_vm11, %v1224_v20, %v486_v26 }
 0x3c1   :  { %v495_v29 = vsel %vm492_vm12, %v494_v27, %v490_v28 }
 0x3c2   :  { %503 = vrot.lane.b32.xlu2 %v495_v29, %s1378_s2  ;;  %522 = vrot.lane.b32.xlu1 %v495_v29, %s1377_s0  ;;  %v499_v33 = vmul.f32 %v498_v32, %v495_v29 }
 0x3c4   :  { %v500_v34 = vadd.f32 %v499_v33, %v1556_v44  ;;  %v535_v44 = vld [vmem:[#allocation4 + $0x30] sm:$0xff] }
 0x3c6   :  { %1225 = vtanh.f32 %v500_v34 }
 0x3cc   :  { %v1226_v35 = vpop.eup %1225 }
 0x40a   :  { %v513_v30 = vpop.permute.xlu2 %512 }
 0x40b   :  { %v515_v31 = vmul.f32 %v513_v30, %v495_v29 }
 0x40d   :  { %517 = vrot.lane.b32.xlu0 %v515_v31, %s1379_s28 }
 0x41c   :  { %v504_v36 = vpop.permute.xlu2 %503 }
 0x41d   :  { %v1598_v37 = vmul.f32 %v1226_v35, %v504_v36 }
 0x41f   :  { %527 = vst.msk [vmem:[#allocation10 + $0x10] sm:$0xff] %vm66_vm0, %v1598_v37  ;;  %1167 = vmatmul.msk.f32.vlgmr.msrb.gmra.mxu0 %vm66_vm0, %v1598_v37  ;;  %1168 = vmatmul.msk.f32.vlgmr.msrb.gmra.mxu1 %vm66_vm0, %v1598_v37 }
 0x420   :  { %850 = vmatpush.msrb.mxu0 %v1424_v5  ;;  %870 = vmatpush.msrb.mxu1 %v1426_v6 }
 0x422   :  { %851 = vmatpush.msrb.mxu0 %v1434_v9  ;;  %871 = vmatpush.msrb.mxu1 %v1438_v10 }
 0x424   :  { %852 = vmatpush.msrb.mxu0 %v1446_v13  ;;  %872 = vmatpush.msrb.mxu1 %v1448_v14 }
 0x426   :  { %853 = vmatpush.msrb.mxu0 %v1456_v16  ;;  %873 = vmatpush.msrb.mxu1 %v1458_v17 }
 0x434   :  { %v523_v41 = vpop.permute.xlu1 %522 }
 0x47f   :  { %v518_v38 = vpop.permute.xlu0 %517 }
 0x480   :  { %v520_v39 = vadd.f32 %v518_v38, %v1576_v50 }
 0x482   :  { %1227 = vtanh.f32 %v520_v39 }
 0x488   :  { %v1228_v40 = vpop.eup %1227 }
 0x489   :  { %v1615_v42 = vmul.f32 %v1228_v40, %v523_v41 }
 0x48b   :  { %v1618_v43 = vrot.slane %v1615_v42, 6 }
 0x48d   :  { %656 = vrot.lane.b32.xlu0 %v1618_v43, %s1377_s0  ;;  %1169 = vmatmul.msk.f32.vlgmr.msrb.gmra.mxu2 %vm66_vm0, %v1618_v43 }
 0x48e   :  { %1170 = vmatmul.msk.f32.vlgmr.msrb.gmra.mxu3 %vm66_vm0, %v1618_v43  ;;  %895 = vmatpush.msrb.mxu2 %v1414_v1 }
 0x48f   :  { %915 = vmatpush.msrb.mxu3 %v1416_v2 }
 0x490   :  { %896 = vmatpush.msrb.mxu2 %v1418_v3 }
 0x491   :  { %916 = vmatpush.msrb.mxu3 %v1422_v4 }
 0x492   :  { %897 = vmatpush.msrb.mxu2 %v1430_v7 }
 0x493   :  { %917 = vmatpush.msrb.mxu3 %v1432_v8 }
 0x494   :  { %898 = vmatpush.msrb.mxu2 %v1440_v11 }
 0x495   :  { %918 = vmatpush.msrb.mxu3 %v1444_v12 }
 0x49c   :  { %v557_v45 = vpop.f32.mrf.mxu0  ;;  %v577_v47 = vpop.f32.mrf.mxu1 }
 0x49d   :  { %v580_v48 = vadd.f32 %v557_v45, %v535_v44  ;;  %v581_v50 = vadd.f32 %v577_v47, %v536_v46 }
 0x4ff   :  { %v657_v58 = vpop.permute.xlu0 %656 }
 0x510   :  { %v602_v51 = vpop.f32.mrf.mxu2 }
 0x511   :  { %v625_v52 = vadd.f32 %v602_v51, %v580_v48  ;;  %v622_v53 = vpop.f32.mrf.mxu3 }
 0x512   :  { %v626_v54 = vadd.f32 %v622_v53, %v581_v50 }
 0x513   :  { %v1171_v55 = vmul.f32 -1.442695, %v625_v52 }
 0x514   :  { %1229 = vtanh.f32 %v626_v54 }
 0x515   :  { %1231 = vpow2.f32 %v1171_v55 }
 0x51a   :  { %v1230_v56 = vpop.eup %1229 }
 0x51b   :  { %v1232_v59 = vpop.eup %1231  ;;  %v659_v60 = vsub.f32 %v1230_v56, %v657_v58  ;;  %v647_v26 = vsub.f32 %v1230_v56, %v1598_v37 }
 0x51c   :  { %v630_v61 = vadd.f32 1.0, %v1232_v59 }
 0x51d   :  { %661 = vrot.lane.b32.xlu1 %v659_v60, %s1377_s0 }
 0x51e   :  { %1233 = vrcp.f32 %v630_v61  ;;  %v642_v15 = vand.u32 2147483648, %v630_v61  ;;  %v640_v19 = vand.u32 2147483647, %v630_v61  ;;  %vm636_vm14 = vweird.f32 %v630_v61 }
 0x520   :  { %v643_v21 = vor.u32 1.1754944e-38, %v642_v15  ;;  %vm641_vm1 = vcmp.eq.f32.partialorder %v640_v19, 8.507059e+37  ;;  %v833_v15 = vld [vmem:[#allocation4 + $0x50] sm:$0xff]  ;;  %v834_v19 = vld [vmem:[#allocation4 + $0x58] sm:$0xff] }
 0x524   :  { %v1234_v62 = vpop.eup %1233 }
 0x525   :  { %v632_v63 = vmul.f32 %v1234_v62, %v630_v61  ;;  %vm637_vm13 = vweird.f32 %v1234_v62 }
 0x526   :  { %vm638_vm15 = vmor %vm636_vm14, %vm637_vm13  ;;  %vm233_vm14 = vcmask 523520  }
 0x527   :  { %v633_v0 = vsub.f32 1.0, %v632_v63 }
 0x529   :  { %v634_v18 = vmul.f32 %v1234_v62, %v633_v0 }
 0x52b   :  { %v635_v20 = vadd.f32 %v1234_v62, %v634_v18 }
 0x52d   :  { %v639_v22 = vsel %vm638_vm15, %v1234_v62, %v635_v20 }
 0x52e   :  { %v644_v23 = vsel %vm641_vm1, %v643_v21, %v639_v22 }
 0x52f   :  { %652 = vrot.lane.b32.xlu1 %v644_v23, %s1378_s2  ;;  %671 = vrot.lane.b32.xlu0 %v644_v23, %s1377_s0  ;;  %v648_v27 = vmul.f32 %v647_v26, %v644_v23 }
 0x531   :  { %v649_v28 = vadd.f32 %v648_v27, %v1598_v37 }
 0x533   :  { %1235 = vtanh.f32 %v649_v28 }
 0x539   :  { %v1236_v29 = vpop.eup %1235 }
 0x58f   :  { %v662_v24 = vpop.permute.xlu1 %661 }
 0x590   :  { %v664_v25 = vmul.f32 %v662_v24, %v644_v23 }
 0x592   :  { %666 = vrot.lane.b32.xlu2 %v664_v25, %s1379_s28 }
 0x5a1   :  { %v653_v30 = vpop.permute.xlu1 %652 }
 0x5a2   :  { %v1640_v31 = vmul.f32 %v1236_v29, %v653_v30 }
 0x5a4   :  { %676 = vst.msk [vmem:[#allocation10 + $0x18] sm:$0xff] %vm66_vm0, %v1640_v31  ;;  %1172 = vmatmul.msk.f32.vlgmr.msra.gmra.mxu0 %vm66_vm0, %v1640_v31  ;;  %1173 = vmatmul.msk.f32.vlgmr.msra.gmra.mxu1 %vm66_vm0, %v1640_v31 }
 0x5a5   :  { %999 = vmatpush.msra.mxu0 %v1424_v5  ;;  %1019 = vmatpush.msra.mxu1 %v1426_v6  ;;  %v672_v5 = vpop.permute.xlu0 %671 }
 0x5a7   :  { %1000 = vmatpush.msra.mxu0 %v1434_v9  ;;  %1020 = vmatpush.msra.mxu1 %v1438_v10  ;;  %v684_v9 = vld [vmem:[#allocation4 + $0x40] sm:$0xff] }
 0x5a9   :  { %1001 = vmatpush.msra.mxu0 %v1446_v13  ;;  %1021 = vmatpush.msra.mxu1 %v1448_v14  ;;  %v685_v13 = vld [vmem:[#allocation4 + $0x48] sm:$0xff] }
 0x5ab   :  { %1002 = vmatpush.msra.mxu0 %v1456_v16  ;;  %1022 = vmatpush.msra.mxu1 %v1458_v17 }
 0x5ec   :  { %v667_v32 = vpop.permute.xlu2 %666 }
 0x5ed   :  { %v669_v33 = vadd.f32 %v667_v32, %v1618_v43 }
 0x5ef   :  { %1237 = vtanh.f32 %v669_v33 }
 0x5f5   :  { %v1238_v34 = vpop.eup %1237 }
 0x5f6   :  { %v1657_v35 = vmul.f32 %v1238_v34, %v672_v5 }
 0x5f8   :  { %v682_v6 = vrot.slane %v1657_v35, 6 }
 0x5fa   :  { %805 = vrot.lane.b32.xlu2 %v682_v6, %s1377_s0  ;;  %1174 = vmatmul.msk.f32.vlgmr.msra.gmra.mxu2 %vm66_vm0, %v682_v6 }
 0x5fb   :  { %1175 = vmatmul.msk.f32.vlgmr.msra.gmra.mxu3 %vm66_vm0, %v682_v6  ;;  %1044 = vmatpush.msra.mxu2 %v1414_v1 }
 0x5fc   :  { %1064 = vmatpush.msra.mxu3 %v1416_v2 }
 0x5fd   :  { %1045 = vmatpush.msra.mxu2 %v1418_v3 }
 0x5fe   :  { %1065 = vmatpush.msra.mxu3 %v1422_v4 }
 0x5ff   :  { %1046 = vmatpush.msra.mxu2 %v1430_v7 }
 0x600   :  { %1066 = vmatpush.msra.mxu3 %v1432_v8 }
 0x601   :  { %1047 = vmatpush.msra.mxu2 %v1440_v11 }
 0x602   :  { %1067 = vmatpush.msra.mxu3 %v1444_v12 }
 0x621   :  { %v706_v10 = vpop.f32.mrf.mxu0  ;;  %v726_v14 = vpop.f32.mrf.mxu1 }
 0x622   :  { %v729_v16 = vadd.f32 %v706_v10, %v684_v9  ;;  %v730_v1 = vadd.f32 %v726_v14, %v685_v13 }
 0x654   :  { %v806_v7 = vpop.permute.xlu2 %805 }
 0x67d   :  { %v751_v17 = vpop.f32.mrf.mxu2 }
 0x67e   :  { %v774_v2 = vadd.f32 %v751_v17, %v729_v16  ;;  %v771_v36 = vpop.f32.mrf.mxu3 }
 0x67f   :  { %v775_v3 = vadd.f32 %v771_v36, %v730_v1 }
 0x680   :  { %v1176_v37 = vmul.f32 -1.442695, %v774_v2 }
 0x681   :  { %1239 = vtanh.f32 %v775_v3 }
 0x682   :  { %1241 = vpow2.f32 %v1176_v37 }
 0x687   :  { %v1240_v4 = vpop.eup %1239 }
 0x688   :  { %v1242_v8 = vpop.eup %1241  ;;  %v808_v38 = vsub.f32 %v1240_v4, %v806_v7  ;;  %v796_v52 = vsub.f32 %v1240_v4, %v1640_v31 }
 0x689   :  { %v779_v11 = vadd.f32 1.0, %v1242_v8 }
 0x68a   :  { %810 = vrot.lane.b32.xlu0 %v808_v38, %s1377_s0 }
 0x68b   :  { %1243 = vrcp.f32 %v779_v11  ;;  %v791_v41 = vand.u32 2147483648, %v779_v11  ;;  %v789_v44 = vand.u32 2147483647, %v779_v11  ;;  %vm785_vm3 = vweird.f32 %v779_v11 }
 0x68d   :  { %v792_v46 = vor.u32 1.1754944e-38, %v791_v41  ;;  %vm790_vm5 = vcmp.eq.f32.partialorder %v789_v44, 8.507059e+37 }
 0x691   :  { %v1244_v12 = vpop.eup %1243 }
 0x692   :  { %v781_v39 = vmul.f32 %v1244_v12, %v779_v11  ;;  %vm786_vm2 = vweird.f32 %v1244_v12 }
 0x693   :  { %vm787_vm4 = vmor %vm785_vm3, %vm786_vm2 }
 0x694   :  { %v782_v40 = vsub.f32 1.0, %v781_v39 }
 0x696   :  { %v783_v43 = vmul.f32 %v1244_v12, %v782_v40 }
 0x698   :  { %v784_v45 = vadd.f32 %v1244_v12, %v783_v43  ;;  %v982_v43 = vld [vmem:[#allocation4 + $0x60] sm:$0xff] }
 0x69a   :  { %v788_v47 = vsel %vm787_vm4, %v1244_v12, %v784_v45  ;;  %v983_v45 = vld [vmem:[#allocation4 + $0x68] sm:$0xff] }
 0x69b   :  { %v793_v48 = vsel %vm790_vm5, %v792_v46, %v788_v47 }
 0x69c   :  { %801 = vrot.lane.b32.xlu0 %v793_v48, %s1378_s2  ;;  %820 = vrot.lane.b32.xlu2 %v793_v48, %s1377_s0  ;;  %v797_v53 = vmul.f32 %v796_v52, %v793_v48 }
 0x69e   :  { %v798_v54 = vadd.f32 %v797_v53, %v1640_v31 }
 0x6a0   :  { %1245 = vtanh.f32 %v798_v54 }
 0x6a6   :  { %v1246_v55 = vpop.eup %1245 }
 0x6f6   :  { %v821_v62 = vpop.permute.xlu2 %820 }
 0x6fc   :  { %v811_v50 = vpop.permute.xlu0 %810 }
 0x6fd   :  { %v813_v51 = vmul.f32 %v811_v50, %v793_v48 }
 0x6ff   :  { %815 = vrot.lane.b32.xlu1 %v813_v51, %s1379_s28 }
 0x70e   :  { %v802_v56 = vpop.permute.xlu0 %801 }
 0x70f   :  { %v804_v58 = vmul.f32 %v1246_v55, %v802_v56 }
 0x711   :  { %825 = vst.msk [vmem:[#allocation10 + $0x20] sm:$0xff] %vm66_vm0, %v804_v58  ;;  %1177 = vmatmul.msk.f32.vlgmr.msrb.gmra.mxu0 %vm66_vm0, %v804_v58  ;;  %1178 = vmatmul.msk.f32.vlgmr.msrb.gmra.mxu1 %vm66_vm0, %v804_v58 }
 0x771   :  { %v816_v59 = vpop.permute.xlu1 %815 }
 0x772   :  { %v818_v60 = vadd.f32 %v816_v59, %v682_v6 }
 0x774   :  { %1247 = vtanh.f32 %v818_v60 }
 0x77a   :  { %v1248_v61 = vpop.eup %1247 }
 0x77b   :  { %v1680_v63 = vmul.f32 %v1248_v61, %v821_v62 }
 0x77d   :  { %v831_v0 = vrot.slane %v1680_v63, 6 }
 0x77f   :  { %954 = vrot.lane.b32.xlu1 %v831_v0, %s1377_s0  ;;  %1179 = vmatmul.msk.f32.vlgmr.msrb.gmra.mxu2 %vm66_vm0, %v831_v0 }
 0x780   :  { %1180 = vmatmul.msk.f32.vlgmr.msrb.gmra.mxu3 %vm66_vm0, %v831_v0 }
 0x78e   :  { %v855_v18 = vpop.f32.mrf.mxu0  ;;  %v875_v20 = vpop.f32.mrf.mxu1 }
 0x78f   :  { %v878_v21 = vadd.f32 %v855_v18, %v833_v15  ;;  %v879_v22 = vadd.f32 %v875_v20, %v834_v19 }
 0x7f1   :  { %v955_v29 = vpop.permute.xlu1 %954 }
 0x802   :  { %v900_v23 = vpop.f32.mrf.mxu2 }
 0x803   :  { %v923_v24 = vadd.f32 %v900_v23, %v878_v21  ;;  %v920_v25 = vpop.f32.mrf.mxu3 }
 0x804   :  { %v924_v26 = vadd.f32 %v920_v25, %v879_v22 }
 0x805   :  { %v1181_v27 = vmul.f32 -1.442695, %v923_v24 }
 0x806   :  { %1249 = vtanh.f32 %v924_v26 }
 0x807   :  { %1251 = vpow2.f32 %v1181_v27 }
 0x80c   :  { %v1250_v28 = vpop.eup %1249 }
 0x80d   :  { %v1252_v30 = vpop.eup %1251  ;;  %v957_v31 = vsub.f32 %v1250_v28, %v955_v29  ;;  %v945_v36 = vsub.f32 %v1250_v28, %v804_v58 }
 0x80e   :  { %v928_v32 = vadd.f32 1.0, %v1252_v30 }
 0x80f   :  { %959 = vrot.lane.b32.xlu2 %v957_v31, %s1377_s0 }
 0x810   :  { %1253 = vrcp.f32 %v928_v32  ;;  %v940_v6 = vand.u32 2147483648, %v928_v32  ;;  %v938_v10 = vand.u32 2147483647, %v928_v32  ;;  %vm934_vm7 = vweird.f32 %v928_v32 }
 0x812   :  { %v941_v14 = vor.u32 1.1754944e-38, %v940_v6  ;;  %vm939_vm9 = vcmp.eq.f32.partialorder %v938_v10, 8.507059e+37 }
 0x816   :  { %v1254_v33 = vpop.eup %1253 }
 0x817   :  { %v930_v34 = vmul.f32 %v1254_v33, %v928_v32  ;;  %vm935_vm6 = vweird.f32 %v1254_v33 }
 0x818   :  { %vm936_vm8 = vmor %vm934_vm7, %vm935_vm6 }
 0x819   :  { %v931_v5 = vsub.f32 1.0, %v930_v34 }
 0x81b   :  { %v932_v9 = vmul.f32 %v1254_v33, %v931_v5 }
 0x81d   :  { %v933_v13 = vadd.f32 %v1254_v33, %v932_v9 }
 0x81f   :  { %v937_v16 = vsel %vm936_vm8, %v1254_v33, %v933_v13 }
 0x820   :  { %v942_v1 = vsel %vm939_vm9, %v941_v14, %v937_v16 }
 0x821   :  { %950 = vrot.lane.b32.xlu2 %v942_v1, %s1378_s2  ;;  %969 = vrot.lane.b32.xlu1 %v942_v1, %s1377_s0  ;;  %v946_v3 = vmul.f32 %v945_v36, %v942_v1 }
 0x823   :  { %v947_v37 = vadd.f32 %v946_v3, %v804_v58 }
 0x825   :  { %1255 = vtanh.f32 %v947_v37 }
 0x82b   :  { %v1256_v4 = vpop.eup %1255 }
 0x869   :  { %v960_v17 = vpop.permute.xlu2 %959 }
 0x86a   :  { %v962_v2 = vmul.f32 %v960_v17, %v942_v1 }
 0x86c   :  { %964 = vrot.lane.b32.xlu0 %v962_v2, %s1379_s28 }
 0x87b   :  { %v951_v7 = vpop.permute.xlu2 %950 }
 0x87c   :  { %v953_v8 = vmul.f32 %v1256_v4, %v951_v7 }
 0x87e   :  { %974 = vst.msk [vmem:[#allocation10 + $0x28] sm:$0xff] %vm66_vm0, %v953_v8  ;;  %1182 = vmatmul.msk.f32.vlgmr.msra.gmra.mxu0 %vm66_vm0, %v953_v8  ;;  %1183 = vmatmul.msk.f32.vlgmr.msra.gmra.mxu1 %vm66_vm0, %v953_v8 }
 0x893   :  { %v970_v39 = vpop.permute.xlu1 %969 }
 0x8de   :  { %v965_v38 = vpop.permute.xlu0 %964 }
 0x8df   :  { %v967_v11 = vadd.f32 %v965_v38, %v831_v0 }
 0x8e1   :  { %1257 = vtanh.f32 %v967_v11 }
 0x8e7   :  { %v1258_v12 = vpop.eup %1257 }
 0x8e8   :  { %v972_v40 = vmul.f32 %v1258_v12, %v970_v39 }
 0x8ea   :  { %v1693_v41 = vrot.slane %v972_v40, 6 }
 0x8ec   :  { %1103 = vrot.lane.b32.xlu0 %v1693_v41, %s1377_s0  ;;  %1184 = vmatmul.msk.f32.vlgmr.msra.gmra.mxu2 %vm66_vm0, %v1693_v41 }
 0x8ed   :  { %1185 = vmatmul.msk.f32.vlgmr.msra.gmra.mxu3 %vm66_vm0, %v1693_v41 }
 0x8fb   :  { %v1004_v44 = vpop.f32.mrf.mxu0  ;;  %v1024_v46 = vpop.f32.mrf.mxu1 }
 0x8fc   :  { %v1027_v47 = vadd.f32 %v1004_v44, %v982_v43  ;;  %v1028_v48 = vadd.f32 %v1024_v46, %v983_v45 }
 0x95e   :  { %v1104_v56 = vpop.permute.xlu0 %1103 }
 0x96f   :  { %v1049_v50 = vpop.f32.mrf.mxu2 }
 0x970   :  { %v1072_v51 = vadd.f32 %v1049_v50, %v1027_v47  ;;  %v1069_v52 = vpop.f32.mrf.mxu3 }
 0x971   :  { %v1073_v53 = vadd.f32 %v1069_v52, %v1028_v48 }
 0x972   :  { %v1186_v54 = vmul.f32 -1.442695, %v1072_v51 }
 0x973   :  { %1259 = vtanh.f32 %v1073_v53 }
 0x974   :  { %1261 = vpow2.f32 %v1186_v54 }
 0x979   :  { %v1260_v55 = vpop.eup %1259 }
 0x97a   :  { %v1262_v58 = vpop.eup %1261  ;;  %v1106_v59 = vsub.f32 %v1260_v55, %v1104_v56  ;;  %v1094_v26 = vsub.f32 %v1260_v55, %v953_v8 }
 0x97b   :  { %v1077_v60 = vadd.f32 1.0, %v1262_v58 }
 0x97c   :  { %1108 = vrot.lane.b32.xlu1 %v1106_v59, %s1377_s0 }
 0x97d   :  { %1263 = vrcp.f32 %v1077_v60  ;;  %v1089_v15 = vand.u32 2147483648, %v1077_v60  ;;  %v1087_v19 = vand.u32 2147483647, %v1077_v60  ;;  %vm1083_vm11 = vweird.f32 %v1077_v60 }
 0x97f   :  { %v1090_v21 = vor.u32 1.1754944e-38, %v1089_v15  ;;  %vm1088_vm13 = vcmp.eq.f32.partialorder %v1087_v19, 8.507059e+37 }
 0x983   :  { %v1264_v61 = vpop.eup %1263 }
 0x984   :  { %v1079_v62 = vmul.f32 %v1264_v61, %v1077_v60  ;;  %vm1084_vm10 = vweird.f32 %v1264_v61 }
 0x985   :  { %vm1085_vm12 = vmor %vm1083_vm11, %vm1084_vm10 }
 0x986   :  { %v1080_v0 = vsub.f32 1.0, %v1079_v62 }
 0x988   :  { %v1081_v18 = vmul.f32 %v1264_v61, %v1080_v0 }
 0x98a   :  { %v1082_v20 = vadd.f32 %v1264_v61, %v1081_v18 }
 0x98c   :  { %v1086_v22 = vsel %vm1085_vm12, %v1264_v61, %v1082_v20 }
 0x98d   :  { %v1091_v23 = vsel %vm1088_vm13, %v1090_v21, %v1086_v22 }
 0x98e   :  { %1099 = vrot.lane.b32.xlu1 %v1091_v23, %s1378_s2  ;;  %1118 = vrot.lane.b32.xlu0 %v1091_v23, %s1377_s0  ;;  %v1095_v27 = vmul.f32 %v1094_v26, %v1091_v23 }
 0x990   :  { %v1096_v28 = vadd.f32 %v1095_v27, %v953_v8 }
 0x992   :  { %1265 = vtanh.f32 %v1096_v28 }
 0x996   :  { %529 = vrot.lane.b32.xlu1 %v1615_v42, %s1377_s0  ;;  %380 = vrot.lane.b32.xlu0 %v1573_v49, %s1377_s0 }
 0x998   :  { %v1266_v42 = vpop.eup %1265 }
 0x99e   :  { %976 = vrot.lane.b32.xlu1 %v972_v40, %s1377_s0  ;;  %827 = vrot.lane.b32.xlu0 %v1680_v63, %s1377_s0 }
 0x9ee   :  { %v1109_v24 = vpop.permute.xlu1 %1108 }
 0x9ef   :  { %v1111_v25 = vmul.f32 %v1109_v24, %v1091_v23 }
 0x9f1   :  { %1113 = vrot.lane.b32.xlu2 %v1111_v25, %s1379_s28 }
 0x9f9   :  { %230 = vrot.lane.b32.xlu2 %v1531_v57, %s1377_s0 }
 0xa00   :  { %v1100_v29 = vpop.permute.xlu1 %1099  ;;  %v1119_v30 = vpop.permute.xlu0 %1118 }
 0xa01   :  { %v1102_v49 = vmul.f32 %v1266_v42, %v1100_v29  ;;  %678 = vrot.lane.b32.xlu2 %v1657_v35, %s1377_s0 }
 0xa03   :  { %1123 = vst.msk [vmem:[#allocation10 + $0x30] sm:$0xff] %vm66_vm0, %v1102_v49 }
 0xa04   :  { %1130 = vst.msk [vmem:[#allocation2] sm:$0xff] %vm66_vm0, %v1102_v49 }
 0xa08   :  { %v530_v63 = vpop.permute.xlu1 %529  ;;  %v381_v31 = vpop.permute.xlu0 %380 }
 0xa09   :  { %532 = vst.msk [vmem:[#allocation10 + $0x10] sm:$0xff] %vm233_vm14, %v530_v63 }
 0xa0a   :  { %383 = vst.msk [vmem:[#allocation10 + $0x8] sm:$0xff] %vm233_vm14, %v381_v31 }
 0xa10   :  { %v977_v57 = vpop.permute.xlu1 %976  ;;  %v828_v32 = vpop.permute.xlu0 %827 }
 0xa11   :  { %979 = vst.msk [vmem:[#allocation10 + $0x28] sm:$0xff] %vm233_vm14, %v977_v57 }
 0xa12   :  { %830 = vst.msk [vmem:[#allocation10 + $0x20] sm:$0xff] %vm233_vm14, %v828_v32 }
 0xa4b   :  { %v1114_v33 = vpop.permute.xlu2 %1113 }
 0xa4c   :  { %v1116_v35 = vadd.f32 %v1114_v33, %v1693_v41 }
 0xa4e   :  { %1267 = vtanh.f32 %v1116_v35 }
 0xa53   :  { %v231_v34 = vpop.permute.xlu2 %230 }
 0xa54   :  { %v1268_v5 = vpop.eup %1267  ;;  %234 = vst.msk [vmem:[#allocation10] sm:$0xff] %vm233_vm14, %v231_v34 }
 0xa55   :  { %v1121_v6 = vmul.f32 %v1268_v5, %v1119_v30 }
 0xa57   :  { %1125 = vrot.lane.b32.xlu2 %v1121_v6, %s1377_s0  ;;  %v1129_v9 = vrot.slane %v1121_v6, 6 }
 0xa59   :  { %1131 = vst.msk [vmem:[#allocation3] sm:$0xff] %vm66_vm0, %v1129_v9 }
 0xa5b   :  { %v679_v10 = vpop.permute.xlu2 %678 }
 0xa5c   :  { %681 = vst.msk [vmem:[#allocation10 + $0x18] sm:$0xff] %vm233_vm14, %v679_v10 }
 0xab1   :  { %v1126_v13 = vpop.permute.xlu2 %1125 }
 0xab2   :  { %1128 = vst.msk [vmem:[#allocation10 + $0x30] sm:$0xff] %vm233_vm14, %v1126_v13 }
 0xab3   :  { %1144 = dma.vmem_to_hbm [thread:$0]  %s1137_s30, 896, %s1139_s6, [#allocation6], %s1381_s7, %s1381_s7, %s1382_s8  }
 0xab4   :  { %1369 = dma.done.wait [#allocation6], 896  }
 0xab5   :  { %1370 = vsyncadd [#allocation6], 4294966400 }
 0xab6   :  { %1149 = vsyncpa [#allocation5], 1 }
 0xab7   :  { %1150 = vsyncpa [#allocation8], 1 }
 0xab8   :  { %1151 = vsyncpa [#allocation6], 1 }

</bundles_post_ra>
